<compile_context>
chip_gen: v6e
topology: v6e:2x2x1
jax: 0.10.0
libtpu: 0.0.40
codegen_flags: <defaults>
</compile_context>

<pallas_src>
import functools

import jax
import jax.numpy as jnp
from jax.experimental import pallas as pl
from jax.experimental.pallas import tpu as pltpu


def _matmul_tb(x, w):
    """x @ w.T without materializing a transpose (MXU consumes w as stored)."""
    return jax.lax.dot_general(
        x, w, (((1,), (1,)), ((), ())), preferred_element_type=jnp.float32)


# -----------------------------------------------------------------------------
# Pallas kernel: one batch item of cross-attention (all heads in one step).
# -----------------------------------------------------------------------------
def _ref_cross_attn_kernel(*refs, nhead, head_dim, eps, has_qpos, has_kpos):
    it = iter(refs)
    q_ref = next(it)
    qpos_ref = next(it) if has_qpos else None
    k_ref = next(it)
    kpos_ref = next(it) if has_kpos else None
    v_ref = next(it)
    id_ref = next(it)
    wq_ref, wk_ref, wv_ref, wo_ref = next(it), next(it), next(it), next(it)
    bq_ref, bk_ref, bv_ref, bo_ref = next(it), next(it), next(it), next(it)
    gamma_ref, beta_ref = next(it), next(it)
    out_ref = next(it)

    # Fused positional-embedding adds (specialized away when pos is None).
    q_in = q_ref[...]
    if has_qpos:
        q_in = q_in + qpos_ref[...]
    k_in = k_ref[...]
    if has_kpos:
        k_in = k_in + kpos_ref[...]
    v_in = v_ref[...]

    # Full-width projections: (rows, E) @ (E, E)^T, 128-deep contraction.
    Q = _matmul_tb(q_in, wq_ref[...]) + bq_ref[...]          # (L, E) f32
    K = _matmul_tb(k_in, wk_ref[...]) + bk_ref[...]          # (S, E) f32
    V = _matmul_tb(v_in, wv_ref[...]) + bv_ref[...]          # (S, E) f32

    # PyTorch scales q (after in-projection + bias) by 1/sqrt(head_dim).
    Qs = Q * (1.0 / (head_dim ** 0.5))

    # Per-head scaled-dot-product attention: short unrolled loop over static
    # lane slices; the attention part is a tiny fraction of the MXU work.
    head_outs = []
    for h in range(nhead):
        sl = slice(h * head_dim, (h + 1) * head_dim)
        s = _matmul_tb(Qs[:, sl], K[:, sl])                  # (L, S)
        m = jnp.max(s, axis=-1, keepdims=True)
        p = jnp.exp(s - m)
        denom = jnp.sum(p, axis=-1, keepdims=True)
        p = p * pl.reciprocal(denom, approx=True)
        head_outs.append(
            jnp.dot(p, V[:, sl], preferred_element_type=jnp.float32))  # (L, hd)
    o = jnp.concatenate(head_outs, axis=-1)                  # (L, E)

    # Single 128-deep output projection.
    tgt2 = _matmul_tb(o, wo_ref[...]) + bo_ref[...]          # (L, E)

    # Residual + LayerNorm (dropout = 0.0).
    x = id_ref[...].astype(jnp.float32) + tgt2
    mu = jnp.mean(x, axis=-1, keepdims=True)
    var = jnp.mean(jnp.square(x - mu), axis=-1, keepdims=True)
    y = (x - mu) * jax.lax.rsqrt(var + eps)
    out_ref[...] = (y * gamma_ref[...] + beta_ref[...]).astype(out_ref.dtype)


# -----------------------------------------------------------------------------
# Wrapper: layout glue (free reshapes only) + pallas_call.
# -----------------------------------------------------------------------------
@functools.partial(jax.jit, static_argnames=("nhead",))
def referring_cross_attention(identity, tgt, key, memory, params, *,
                              nhead, pos=None, query_pos=None):
    L, N, E = tgt.shape
    S = key.shape[0]
    assert E % nhead == 0, "d_model must be divisible by nhead"
    hd = E // nhead

    # (seq, batch, E) -> (seq, batch, 1, E): free reshape; keeps the batch index
    # out of the block's last-two (tiled) dims so we can grid over batch without
    # any HBM transpose pass.
    def _4d(x):
        return x.reshape(x.shape[0], x.shape[1], 1, x.shape[2])

    def seq_spec(length):
        return pl.BlockSpec((length, None, None, E), lambda b: (0, b, 0, 0))

    w_spec = pl.BlockSpec((E, E), lambda b: (0, 0))      # grid-resident weights
    vec_spec = pl.BlockSpec((1, E), lambda b: (0, 0))    # grid-resident vectors

    has_qpos = query_pos is not None
    has_kpos = pos is not None

    in_arrays = [_4d(tgt)]
    in_specs = [seq_spec(L)]
    if has_qpos:
        in_arrays.append(_4d(query_pos))
        in_specs.append(seq_spec(L))
    in_arrays.append(_4d(key))
    in_specs.append(seq_spec(S))
    if has_kpos:
        in_arrays.append(_4d(pos))
        in_specs.append(seq_spec(S))
    in_arrays += [_4d(memory), _4d(identity),
                  params["wq"], params["wk"], params["wv"], params["wo"],
                  params["bq"].reshape(1, E), params["bk"].reshape(1, E),
                  params["bv"].reshape(1, E), params["bo"].reshape(1, E),
                  params["ln_gamma"].reshape(1, E),
                  params["ln_beta"].reshape(1, E)]
    in_specs += [seq_spec(S), seq_spec(L),
                 w_spec, w_spec, w_spec, w_spec,
                 vec_spec, vec_spec, vec_spec, vec_spec, vec_spec, vec_spec]

    kernel = functools.partial(
        _ref_cross_attn_kernel, nhead=nhead, head_dim=hd, eps=1e-5,
        has_qpos=has_qpos, has_kpos=has_kpos)

    out4 = pl.pallas_call(
        kernel,
        out_shape=jax.ShapeDtypeStruct((L, N, 1, E), tgt.dtype),
        grid=(N,),
        in_specs=in_specs,
        out_specs=seq_spec(L),
        compiler_params=pltpu.CompilerParams(
            dimension_semantics=("parallel",)),
    )(*in_arrays)

    return out4.reshape(L, N, E)


# -----------------------------------------------------------------------------
# Pure-JAX reference (silent correctness check).
# -----------------------------------------------------------------------------
def _reference(identity, tgt, key, memory, params, *, nhead, pos=None, query_pos=None):
    L, N, E = tgt.shape
    hd = E // nhead
    q_in = tgt if query_pos is None else tgt + query_pos
    k_in = key if pos is None else key + pos

    Q = jnp.einsum("lne,fe->lnf", q_in, params["wq"]) + params["bq"]
    K = jnp.einsum("sne,fe->snf", k_in, params["wk"]) + params["bk"]
    V = jnp.einsum("sne,fe->snf", memory, params["wv"]) + params["bv"]

    Qh = Q.reshape(L, N, nhead, hd) / (hd ** 0.5)
    Kh = K.reshape(K.shape[0], N, nhead, hd)
    Vh = V.reshape(V.shape[0], N, nhead, hd)
    s = jnp.einsum("lnhd,snhd->nhls", Qh, Kh)
    p = jax.nn.softmax(s, axis=-1)
    o = jnp.einsum("nhls,snhd->lnhd", p, Vh).reshape(L, N, E)
    tgt2 = jnp.einsum("lne,fe->lnf", o, params["wo"]) + params["bo"]

    x = identity + tgt2
    mu = jnp.mean(x, axis=-1, keepdims=True)
    var = jnp.mean((x - mu) ** 2, axis=-1, keepdims=True)
    return (x - mu) / jnp.sqrt(var + 1e-5) * params["ln_gamma"] + params["ln_beta"]


# -----------------------------------------------------------------------------
# Deterministic parameter init (shapes match nn.MultiheadAttention + LayerNorm).
# -----------------------------------------------------------------------------
def _xavier_uniform(rng, shape):
    fan_out, fan_in = shape
    bound = (6.0 / (fan_in + fan_out)) ** 0.5
    return jax.random.uniform(rng, shape, jnp.float32, -bound, bound)


def make_params(rng, d_model):
    ks = jax.random.split(rng, 8)
    wq = _xavier_uniform(ks[0], (d_model, d_model))
    wk = _xavier_uniform(ks[1], (d_model, d_model))
    wv = _xavier_uniform(ks[2], (d_model, d_model))
    wo = _xavier_uniform(ks[3], (d_model, d_model))
    # PyTorch inits these biases to zero; small random values exercise the
    # kernel's bias paths without changing the forward-pass semantics.
    bq = 0.02 * jax.random.normal(ks[4], (d_model,), jnp.float32)
    bk = 0.02 * jax.random.normal(ks[5], (d_model,), jnp.float32)
    bv = 0.02 * jax.random.normal(ks[6], (d_model,), jnp.float32)
    bo = 0.02 * jax.random.normal(ks[7], (d_model,), jnp.float32)
    return dict(
        wq=wq, wk=wk, wv=wv, wo=wo, bq=bq, bk=bk, bv=bv, bo=bo,
        ln_gamma=jnp.ones((d_model,), jnp.float32),
        ln_beta=jnp.zeros((d_model,), jnp.float32),
    )


if __name__ == "__main__":
    d_model, nhead = 128, 8       # head_dim = 16 (lane-dense E)
    L, S, N = 8, 16, 2            # L queries, S keys/values, N batch

    root = jax.random.PRNGKey(0)
    kp, k1, k2, k3, k4, k5, k6 = jax.random.split(root, 7)
    params = make_params(kp, d_model)

    identity = jax.random.normal(k1, (L, N, d_model), jnp.float32)
    tgt = jax.random.normal(k2, (L, N, d_model), jnp.float32)
    key = jax.random.normal(k3, (S, N, d_model), jnp.float32)
    memory = jax.random.normal(k4, (S, N, d_model), jnp.float32)
    query_pos = jax.random.normal(k5, (L, N, d_model), jnp.float32)
    pos = jax.random.normal(k6, (S, N, d_model), jnp.float32)

    out = referring_cross_attention(identity, tgt, key, memory, params,
                                    nhead=nhead, pos=pos, query_pos=query_pos)
    out = jax.block_until_ready(out)

    ref = _reference(identity, tgt, key, memory, params,
                     nhead=nhead, pos=pos, query_pos=query_pos)
    assert out.shape == (L, N, d_model)
    # Tolerance accounts for the approx (EUP) reciprocal in the softmax and for
    # default-precision MXU matmuls (bf16 passes, f32 accumulation).
    assert jnp.allclose(out, ref, atol=1e-2, rtol=1e-2), \
        float(jnp.max(jnp.abs(out - ref)))

    print("KERNEL_OK")
</pallas_src>

<mosaic_0001>
module attributes {stable_mosaic.version = 11 : i64} {
  func.func @_ref_cross_attn_kernel(%arg0: i32, %arg1: memref<8x1x1x128xf32, #tpu.memory_space<vmem>>, %arg2: memref<8x1x1x128xf32, #tpu.memory_space<vmem>>, %arg3: memref<16x1x1x128xf32, #tpu.memory_space<vmem>>, %arg4: memref<16x1x1x128xf32, #tpu.memory_space<vmem>>, %arg5: memref<16x1x1x128xf32, #tpu.memory_space<vmem>>, %arg6: memref<8x1x1x128xf32, #tpu.memory_space<vmem>>, %arg7: memref<128x128xf32, #tpu.memory_space<vmem>>, %arg8: memref<128x128xf32, #tpu.memory_space<vmem>>, %arg9: memref<128x128xf32, #tpu.memory_space<vmem>>, %arg10: memref<128x128xf32, #tpu.memory_space<vmem>>, %arg11: memref<1x128xf32, #tpu.memory_space<vmem>>, %arg12: memref<1x128xf32, #tpu.memory_space<vmem>>, %arg13: memref<1x128xf32, #tpu.memory_space<vmem>>, %arg14: memref<1x128xf32, #tpu.memory_space<vmem>>, %arg15: memref<1x128xf32, #tpu.memory_space<vmem>>, %arg16: memref<1x128xf32, #tpu.memory_space<vmem>>, %arg17: memref<8x1x1x128xf32, #tpu.memory_space<vmem>>) attributes {dimension_semantics = [#tpu.dimension_semantics<parallel>], iteration_bounds = array<i64: 2>, scalar_prefetch = 0 : i64, scratch_operands = 0 : i64, tpu.core_type = #tpu.core_type<tc>, window_params = [{transform_indices = @transform_0, window_bounds = array<i64: 8, 1, 1, 128>}, {transform_indices = @transform_1, window_bounds = array<i64: 8, 1, 1, 128>}, {transform_indices = @transform_2, window_bounds = array<i64: 16, 1, 1, 128>}, {transform_indices = @transform_3, window_bounds = array<i64: 16, 1, 1, 128>}, {transform_indices = @transform_4, window_bounds = array<i64: 16, 1, 1, 128>}, {transform_indices = @transform_5, window_bounds = array<i64: 8, 1, 1, 128>}, {pipeline_mode = #tpu.pipeline_mode<synchronous>, transform_indices = @transform_6, window_bounds = array<i64: 128, 128>}, {pipeline_mode = #tpu.pipeline_mode<synchronous>, transform_indices = @transform_7, window_bounds = array<i64: 128, 128>}, {pipeline_mode = #tpu.pipeline_mode<synchronous>, transform_indices = @transform_8, window_bounds = array<i64: 128, 128>}, {pipeline_mode = #tpu.pipeline_mode<synchronous>, transform_indices = @transform_9, window_bounds = array<i64: 128, 128>}, {pipeline_mode = #tpu.pipeline_mode<synchronous>, transform_indices = @transform_10, window_bounds = array<i64: 1, 128>}, {pipeline_mode = #tpu.pipeline_mode<synchronous>, transform_indices = @transform_11, window_bounds = array<i64: 1, 128>}, {pipeline_mode = #tpu.pipeline_mode<synchronous>, transform_indices = @transform_12, window_bounds = array<i64: 1, 128>}, {pipeline_mode = #tpu.pipeline_mode<synchronous>, transform_indices = @transform_13, window_bounds = array<i64: 1, 128>}, {pipeline_mode = #tpu.pipeline_mode<synchronous>, transform_indices = @transform_14, window_bounds = array<i64: 1, 128>}, {pipeline_mode = #tpu.pipeline_mode<synchronous>, transform_indices = @transform_15, window_bounds = array<i64: 1, 128>}, {transform_indices = @transform_16, window_bounds = array<i64: 8, 1, 1, 128>}]} {
    %c0 = arith.constant 0 : index
    %c0_0 = arith.constant 0 : index
    %c0_1 = arith.constant 0 : index
    %c0_2 = arith.constant 0 : index
    %0 = vector.load %arg1[%c0, %c0_0, %c0_1, %c0_2] : memref<8x1x1x128xf32, #tpu.memory_space<vmem>>, vector<8x1x1x128xf32>
    %1 = vector.shape_cast %0 : vector<8x1x1x128xf32> to vector<8x128xf32>
    %c0_3 = arith.constant 0 : index
    %c0_4 = arith.constant 0 : index
    %c0_5 = arith.constant 0 : index
    %c0_6 = arith.constant 0 : index
    %2 = vector.load %arg2[%c0_3, %c0_4, %c0_5, %c0_6] : memref<8x1x1x128xf32, #tpu.memory_space<vmem>>, vector<8x1x1x128xf32>
    %3 = vector.shape_cast %2 : vector<8x1x1x128xf32> to vector<8x128xf32>
    %4 = arith.addf %1, %3 : vector<8x128xf32>
    %c0_7 = arith.constant 0 : index
    %c0_8 = arith.constant 0 : index
    %c0_9 = arith.constant 0 : index
    %c0_10 = arith.constant 0 : index
    %5 = vector.load %arg3[%c0_7, %c0_8, %c0_9, %c0_10] : memref<16x1x1x128xf32, #tpu.memory_space<vmem>>, vector<16x1x1x128xf32>
    %6 = vector.shape_cast %5 : vector<16x1x1x128xf32> to vector<16x128xf32>
    %c0_11 = arith.constant 0 : index
    %c0_12 = arith.constant 0 : index
    %c0_13 = arith.constant 0 : index
    %c0_14 = arith.constant 0 : index
    %7 = vector.load %arg4[%c0_11, %c0_12, %c0_13, %c0_14] : memref<16x1x1x128xf32, #tpu.memory_space<vmem>>, vector<16x1x1x128xf32>
    %8 = vector.shape_cast %7 : vector<16x1x1x128xf32> to vector<16x128xf32>
    %9 = arith.addf %6, %8 : vector<16x128xf32>
    %c0_15 = arith.constant 0 : index
    %c0_16 = arith.constant 0 : index
    %c0_17 = arith.constant 0 : index
    %c0_18 = arith.constant 0 : index
    %10 = vector.load %arg5[%c0_15, %c0_16, %c0_17, %c0_18] : memref<16x1x1x128xf32, #tpu.memory_space<vmem>>, vector<16x1x1x128xf32>
    %11 = vector.shape_cast %10 : vector<16x1x1x128xf32> to vector<16x128xf32>
    %c0_19 = arith.constant 0 : index
    %c0_20 = arith.constant 0 : index
    %12 = vector.load %arg7[%c0_19, %c0_20] : memref<128x128xf32, #tpu.memory_space<vmem>>, vector<128x128xf32>
    %cst = arith.constant dense<0.000000e+00> : vector<8x128xf32>
    %13 = tpu.matmul %4, %12, %cst {dimension_numbers = #tpu.dot_dimension_numbers<[1], [1], [0], [0], [0, 0, 1, 0], [], []>} : vector<8x128xf32>, vector<128x128xf32>, vector<8x128xf32> -> vector<8x128xf32>
    %c0_21 = arith.constant 0 : index
    %c0_22 = arith.constant 0 : index
    %14 = vector.load %arg11[%c0_21, %c0_22] : memref<1x128xf32, #tpu.memory_space<vmem>>, vector<1x128xf32>
    %15 = vector.broadcast %14 : vector<1x128xf32> to vector<8x128xf32>
    %16 = arith.addf %13, %15 : vector<8x128xf32>
    %c0_23 = arith.constant 0 : index
    %c0_24 = arith.constant 0 : index
    %17 = vector.load %arg8[%c0_23, %c0_24] : memref<128x128xf32, #tpu.memory_space<vmem>>, vector<128x128xf32>
    %cst_25 = arith.constant dense<0.000000e+00> : vector<16x128xf32>
    %18 = tpu.matmul %9, %17, %cst_25 {dimension_numbers = #tpu.dot_dimension_numbers<[1], [1], [0], [0], [0, 0, 1, 0], [], []>} : vector<16x128xf32>, vector<128x128xf32>, vector<16x128xf32> -> vector<16x128xf32>
    %c0_26 = arith.constant 0 : index
    %c0_27 = arith.constant 0 : index
    %19 = vector.load %arg12[%c0_26, %c0_27] : memref<1x128xf32, #tpu.memory_space<vmem>>, vector<1x128xf32>
    %20 = vector.broadcast %19 : vector<1x128xf32> to vector<16x128xf32>
    %21 = arith.addf %18, %20 : vector<16x128xf32>
    %c0_28 = arith.constant 0 : index
    %c0_29 = arith.constant 0 : index
    %22 = vector.load %arg9[%c0_28, %c0_29] : memref<128x128xf32, #tpu.memory_space<vmem>>, vector<128x128xf32>
    %cst_30 = arith.constant dense<0.000000e+00> : vector<16x128xf32>
    %23 = tpu.matmul %11, %22, %cst_30 {dimension_numbers = #tpu.dot_dimension_numbers<[1], [1], [0], [0], [0, 0, 1, 0], [], []>} : vector<16x128xf32>, vector<128x128xf32>, vector<16x128xf32> -> vector<16x128xf32>
    %c0_31 = arith.constant 0 : index
    %c0_32 = arith.constant 0 : index
    %24 = vector.load %arg13[%c0_31, %c0_32] : memref<1x128xf32, #tpu.memory_space<vmem>>, vector<1x128xf32>
    %25 = vector.broadcast %24 : vector<1x128xf32> to vector<16x128xf32>
    %26 = arith.addf %23, %25 : vector<16x128xf32>
    %cst_33 = arith.constant 2.500000e-01 : f32
    %27 = vector.broadcast %cst_33 : f32 to vector<8x128xf32>
    %28 = arith.mulf %16, %27 : vector<8x128xf32>
    %29 = vector.extract_strided_slice %28 {offsets = [0, 0], sizes = [8, 16], strides = [1, 1]} : vector<8x128xf32> to vector<8x16xf32>
    %30 = vector.extract_strided_slice %21 {offsets = [0, 0], sizes = [16, 16], strides = [1, 1]} : vector<16x128xf32> to vector<16x16xf32>
    %cst_34 = arith.constant dense<0.000000e+00> : vector<8x16xf32>
    %31 = tpu.matmul %29, %30, %cst_34 {dimension_numbers = #tpu.dot_dimension_numbers<[1], [1], [0], [0], [0, 0, 1, 0], [], []>} : vector<8x16xf32>, vector<16x16xf32>, vector<8x16xf32> -> vector<8x16xf32>
    %cst_35 = arith.constant dense<0xFF800000> : vector<8xf32>
    %32 = vector.multi_reduction <maximumf>, %31, %cst_35 [1] : vector<8x16xf32> to vector<8xf32>
    %33 = vector.shape_cast %32 : vector<8xf32> to vector<8x1xf32>
    %34 = vector.broadcast %33 : vector<8x1xf32> to vector<8x16xf32>
    %35 = arith.subf %31, %34 : vector<8x16xf32>
    %36 = math.exp %35 : vector<8x16xf32>
    %cst_36 = arith.constant dense<0.000000e+00> : vector<8xf32>
    %37 = vector.multi_reduction <add>, %36, %cst_36 [1] : vector<8x16xf32> to vector<8xf32>
    %38 = vector.shape_cast %37 : vector<8xf32> to vector<8x1xf32>
    %39 = tpu.reciprocal %38 {approx = true} : vector<8x1xf32> -> vector<8x1xf32>
    %40 = vector.broadcast %39 : vector<8x1xf32> to vector<8x16xf32>
    %41 = arith.mulf %36, %40 : vector<8x16xf32>
    %42 = vector.extract_strided_slice %26 {offsets = [0, 0], sizes = [16, 16], strides = [1, 1]} : vector<16x128xf32> to vector<16x16xf32>
    %cst_37 = arith.constant dense<0.000000e+00> : vector<8x16xf32>
    %43 = tpu.matmul %41, %42, %cst_37 {dimension_numbers = #tpu.dot_dimension_numbers<[1], [0], [0], [1], [0, 0, 1, 1], [], []>} : vector<8x16xf32>, vector<16x16xf32>, vector<8x16xf32> -> vector<8x16xf32>
    %44 = vector.extract_strided_slice %28 {offsets = [0, 16], sizes = [8, 16], strides = [1, 1]} : vector<8x128xf32> to vector<8x16xf32>
    %45 = vector.extract_strided_slice %21 {offsets = [0, 16], sizes = [16, 16], strides = [1, 1]} : vector<16x128xf32> to vector<16x16xf32>
    %cst_38 = arith.constant dense<0.000000e+00> : vector<8x16xf32>
    %46 = tpu.matmul %44, %45, %cst_38 {dimension_numbers = #tpu.dot_dimension_numbers<[1], [1], [0], [0], [0, 0, 1, 0], [], []>} : vector<8x16xf32>, vector<16x16xf32>, vector<8x16xf32> -> vector<8x16xf32>
    %cst_39 = arith.constant dense<0xFF800000> : vector<8xf32>
    %47 = vector.multi_reduction <maximumf>, %46, %cst_39 [1] : vector<8x16xf32> to vector<8xf32>
    %48 = vector.shape_cast %47 : vector<8xf32> to vector<8x1xf32>
    %49 = vector.broadcast %48 : vector<8x1xf32> to vector<8x16xf32>
    %50 = arith.subf %46, %49 : vector<8x16xf32>
    %51 = math.exp %50 : vector<8x16xf32>
    %cst_40 = arith.constant dense<0.000000e+00> : vector<8xf32>
    %52 = vector.multi_reduction <add>, %51, %cst_40 [1] : vector<8x16xf32> to vector<8xf32>
    %53 = vector.shape_cast %52 : vector<8xf32> to vector<8x1xf32>
    %54 = tpu.reciprocal %53 {approx = true} : vector<8x1xf32> -> vector<8x1xf32>
    %55 = vector.broadcast %54 : vector<8x1xf32> to vector<8x16xf32>
    %56 = arith.mulf %51, %55 : vector<8x16xf32>
    %57 = vector.extract_strided_slice %26 {offsets = [0, 16], sizes = [16, 16], strides = [1, 1]} : vector<16x128xf32> to vector<16x16xf32>
    %cst_41 = arith.constant dense<0.000000e+00> : vector<8x16xf32>
    %58 = tpu.matmul %56, %57, %cst_41 {dimension_numbers = #tpu.dot_dimension_numbers<[1], [0], [0], [1], [0, 0, 1, 1], [], []>} : vector<8x16xf32>, vector<16x16xf32>, vector<8x16xf32> -> vector<8x16xf32>
    %59 = vector.extract_strided_slice %28 {offsets = [0, 32], sizes = [8, 16], strides = [1, 1]} : vector<8x128xf32> to vector<8x16xf32>
    %60 = vector.extract_strided_slice %21 {offsets = [0, 32], sizes = [16, 16], strides = [1, 1]} : vector<16x128xf32> to vector<16x16xf32>
    %cst_42 = arith.constant dense<0.000000e+00> : vector<8x16xf32>
    %61 = tpu.matmul %59, %60, %cst_42 {dimension_numbers = #tpu.dot_dimension_numbers<[1], [1], [0], [0], [0, 0, 1, 0], [], []>} : vector<8x16xf32>, vector<16x16xf32>, vector<8x16xf32> -> vector<8x16xf32>
    %cst_43 = arith.constant dense<0xFF800000> : vector<8xf32>
    %62 = vector.multi_reduction <maximumf>, %61, %cst_43 [1] : vector<8x16xf32> to vector<8xf32>
    %63 = vector.shape_cast %62 : vector<8xf32> to vector<8x1xf32>
    %64 = vector.broadcast %63 : vector<8x1xf32> to vector<8x16xf32>
    %65 = arith.subf %61, %64 : vector<8x16xf32>
    %66 = math.exp %65 : vector<8x16xf32>
    %cst_44 = arith.constant dense<0.000000e+00> : vector<8xf32>
    %67 = vector.multi_reduction <add>, %66, %cst_44 [1] : vector<8x16xf32> to vector<8xf32>
    %68 = vector.shape_cast %67 : vector<8xf32> to vector<8x1xf32>
    %69 = tpu.reciprocal %68 {approx = true} : vector<8x1xf32> -> vector<8x1xf32>
    %70 = vector.broadcast %69 : vector<8x1xf32> to vector<8x16xf32>
    %71 = arith.mulf %66, %70 : vector<8x16xf32>
    %72 = vector.extract_strided_slice %26 {offsets = [0, 32], sizes = [16, 16], strides = [1, 1]} : vector<16x128xf32> to vector<16x16xf32>
    %cst_45 = arith.constant dense<0.000000e+00> : vector<8x16xf32>
    %73 = tpu.matmul %71, %72, %cst_45 {dimension_numbers = #tpu.dot_dimension_numbers<[1], [0], [0], [1], [0, 0, 1, 1], [], []>} : vector<8x16xf32>, vector<16x16xf32>, vector<8x16xf32> -> vector<8x16xf32>
    %74 = vector.extract_strided_slice %28 {offsets = [0, 48], sizes = [8, 16], strides = [1, 1]} : vector<8x128xf32> to vector<8x16xf32>
    %75 = vector.extract_strided_slice %21 {offsets = [0, 48], sizes = [16, 16], strides = [1, 1]} : vector<16x128xf32> to vector<16x16xf32>
    %cst_46 = arith.constant dense<0.000000e+00> : vector<8x16xf32>
    %76 = tpu.matmul %74, %75, %cst_46 {dimension_numbers = #tpu.dot_dimension_numbers<[1], [1], [0], [0], [0, 0, 1, 0], [], []>} : vector<8x16xf32>, vector<16x16xf32>, vector<8x16xf32> -> vector<8x16xf32>
    %cst_47 = arith.constant dense<0xFF800000> : vector<8xf32>
    %77 = vector.multi_reduction <maximumf>, %76, %cst_47 [1] : vector<8x16xf32> to vector<8xf32>
    %78 = vector.shape_cast %77 : vector<8xf32> to vector<8x1xf32>
    %79 = vector.broadcast %78 : vector<8x1xf32> to vector<8x16xf32>
    %80 = arith.subf %76, %79 : vector<8x16xf32>
    %81 = math.exp %80 : vector<8x16xf32>
    %cst_48 = arith.constant dense<0.000000e+00> : vector<8xf32>
    %82 = vector.multi_reduction <add>, %81, %cst_48 [1] : vector<8x16xf32> to vector<8xf32>
    %83 = vector.shape_cast %82 : vector<8xf32> to vector<8x1xf32>
    %84 = tpu.reciprocal %83 {approx = true} : vector<8x1xf32> -> vector<8x1xf32>
    %85 = vector.broadcast %84 : vector<8x1xf32> to vector<8x16xf32>
    %86 = arith.mulf %81, %85 : vector<8x16xf32>
    %87 = vector.extract_strided_slice %26 {offsets = [0, 48], sizes = [16, 16], strides = [1, 1]} : vector<16x128xf32> to vector<16x16xf32>
    %cst_49 = arith.constant dense<0.000000e+00> : vector<8x16xf32>
    %88 = tpu.matmul %86, %87, %cst_49 {dimension_numbers = #tpu.dot_dimension_numbers<[1], [0], [0], [1], [0, 0, 1, 1], [], []>} : vector<8x16xf32>, vector<16x16xf32>, vector<8x16xf32> -> vector<8x16xf32>
    %89 = vector.extract_strided_slice %28 {offsets = [0, 64], sizes = [8, 16], strides = [1, 1]} : vector<8x128xf32> to vector<8x16xf32>
    %90 = vector.extract_strided_slice %21 {offsets = [0, 64], sizes = [16, 16], strides = [1, 1]} : vector<16x128xf32> to vector<16x16xf32>
    %cst_50 = arith.constant dense<0.000000e+00> : vector<8x16xf32>
    %91 = tpu.matmul %89, %90, %cst_50 {dimension_numbers = #tpu.dot_dimension_numbers<[1], [1], [0], [0], [0, 0, 1, 0], [], []>} : vector<8x16xf32>, vector<16x16xf32>, vector<8x16xf32> -> vector<8x16xf32>
    %cst_51 = arith.constant dense<0xFF800000> : vector<8xf32>
    %92 = vector.multi_reduction <maximumf>, %91, %cst_51 [1] : vector<8x16xf32> to vector<8xf32>
    %93 = vector.shape_cast %92 : vector<8xf32> to vector<8x1xf32>
    %94 = vector.broadcast %93 : vector<8x1xf32> to vector<8x16xf32>
    %95 = arith.subf %91, %94 : vector<8x16xf32>
    %96 = math.exp %95 : vector<8x16xf32>
    %cst_52 = arith.constant dense<0.000000e+00> : vector<8xf32>
    %97 = vector.multi_reduction <add>, %96, %cst_52 [1] : vector<8x16xf32> to vector<8xf32>
    %98 = vector.shape_cast %97 : vector<8xf32> to vector<8x1xf32>
    %99 = tpu.reciprocal %98 {approx = true} : vector<8x1xf32> -> vector<8x1xf32>
    %100 = vector.broadcast %99 : vector<8x1xf32> to vector<8x16xf32>
    %101 = arith.mulf %96, %100 : vector<8x16xf32>
    %102 = vector.extract_strided_slice %26 {offsets = [0, 64], sizes = [16, 16], strides = [1, 1]} : vector<16x128xf32> to vector<16x16xf32>
    %cst_53 = arith.constant dense<0.000000e+00> : vector<8x16xf32>
    %103 = tpu.matmul %101, %102, %cst_53 {dimension_numbers = #tpu.dot_dimension_numbers<[1], [0], [0], [1], [0, 0, 1, 1], [], []>} : vector<8x16xf32>, vector<16x16xf32>, vector<8x16xf32> -> vector<8x16xf32>
    %104 = vector.extract_strided_slice %28 {offsets = [0, 80], sizes = [8, 16], strides = [1, 1]} : vector<8x128xf32> to vector<8x16xf32>
    %105 = vector.extract_strided_slice %21 {offsets = [0, 80], sizes = [16, 16], strides = [1, 1]} : vector<16x128xf32> to vector<16x16xf32>
    %cst_54 = arith.constant dense<0.000000e+00> : vector<8x16xf32>
    %106 = tpu.matmul %104, %105, %cst_54 {dimension_numbers = #tpu.dot_dimension_numbers<[1], [1], [0], [0], [0, 0, 1, 0], [], []>} : vector<8x16xf32>, vector<16x16xf32>, vector<8x16xf32> -> vector<8x16xf32>
    %cst_55 = arith.constant dense<0xFF800000> : vector<8xf32>
    %107 = vector.multi_reduction <maximumf>, %106, %cst_55 [1] : vector<8x16xf32> to vector<8xf32>
    %108 = vector.shape_cast %107 : vector<8xf32> to vector<8x1xf32>
    %109 = vector.broadcast %108 : vector<8x1xf32> to vector<8x16xf32>
    %110 = arith.subf %106, %109 : vector<8x16xf32>
    %111 = math.exp %110 : vector<8x16xf32>
    %cst_56 = arith.constant dense<0.000000e+00> : vector<8xf32>
    %112 = vector.multi_reduction <add>, %111, %cst_56 [1] : vector<8x16xf32> to vector<8xf32>
    %113 = vector.shape_cast %112 : vector<8xf32> to vector<8x1xf32>
    %114 = tpu.reciprocal %113 {approx = true} : vector<8x1xf32> -> vector<8x1xf32>
    %115 = vector.broadcast %114 : vector<8x1xf32> to vector<8x16xf32>
    %116 = arith.mulf %111, %115 : vector<8x16xf32>
    %117 = vector.extract_strided_slice %26 {offsets = [0, 80], sizes = [16, 16], strides = [1, 1]} : vector<16x128xf32> to vector<16x16xf32>
    %cst_57 = arith.constant dense<0.000000e+00> : vector<8x16xf32>
    %118 = tpu.matmul %116, %117, %cst_57 {dimension_numbers = #tpu.dot_dimension_numbers<[1], [0], [0], [1], [0, 0, 1, 1], [], []>} : vector<8x16xf32>, vector<16x16xf32>, vector<8x16xf32> -> vector<8x16xf32>
    %119 = vector.extract_strided_slice %28 {offsets = [0, 96], sizes = [8, 16], strides = [1, 1]} : vector<8x128xf32> to vector<8x16xf32>
    %120 = vector.extract_strided_slice %21 {offsets = [0, 96], sizes = [16, 16], strides = [1, 1]} : vector<16x128xf32> to vector<16x16xf32>
    %cst_58 = arith.constant dense<0.000000e+00> : vector<8x16xf32>
    %121 = tpu.matmul %119, %120, %cst_58 {dimension_numbers = #tpu.dot_dimension_numbers<[1], [1], [0], [0], [0, 0, 1, 0], [], []>} : vector<8x16xf32>, vector<16x16xf32>, vector<8x16xf32> -> vector<8x16xf32>
    %cst_59 = arith.constant dense<0xFF800000> : vector<8xf32>
    %122 = vector.multi_reduction <maximumf>, %121, %cst_59 [1] : vector<8x16xf32> to vector<8xf32>
    %123 = vector.shape_cast %122 : vector<8xf32> to vector<8x1xf32>
    %124 = vector.broadcast %123 : vector<8x1xf32> to vector<8x16xf32>
    %125 = arith.subf %121, %124 : vector<8x16xf32>
    %126 = math.exp %125 : vector<8x16xf32>
    %cst_60 = arith.constant dense<0.000000e+00> : vector<8xf32>
    %127 = vector.multi_reduction <add>, %126, %cst_60 [1] : vector<8x16xf32> to vector<8xf32>
    %128 = vector.shape_cast %127 : vector<8xf32> to vector<8x1xf32>
    %129 = tpu.reciprocal %128 {approx = true} : vector<8x1xf32> -> vector<8x1xf32>
    %130 = vector.broadcast %129 : vector<8x1xf32> to vector<8x16xf32>
    %131 = arith.mulf %126, %130 : vector<8x16xf32>
    %132 = vector.extract_strided_slice %26 {offsets = [0, 96], sizes = [16, 16], strides = [1, 1]} : vector<16x128xf32> to vector<16x16xf32>
    %cst_61 = arith.constant dense<0.000000e+00> : vector<8x16xf32>
    %133 = tpu.matmul %131, %132, %cst_61 {dimension_numbers = #tpu.dot_dimension_numbers<[1], [0], [0], [1], [0, 0, 1, 1], [], []>} : vector<8x16xf32>, vector<16x16xf32>, vector<8x16xf32> -> vector<8x16xf32>
    %134 = vector.extract_strided_slice %28 {offsets = [0, 112], sizes = [8, 16], strides = [1, 1]} : vector<8x128xf32> to vector<8x16xf32>
    %135 = vector.extract_strided_slice %21 {offsets = [0, 112], sizes = [16, 16], strides = [1, 1]} : vector<16x128xf32> to vector<16x16xf32>
    %cst_62 = arith.constant dense<0.000000e+00> : vector<8x16xf32>
    %136 = tpu.matmul %134, %135, %cst_62 {dimension_numbers = #tpu.dot_dimension_numbers<[1], [1], [0], [0], [0, 0, 1, 0], [], []>} : vector<8x16xf32>, vector<16x16xf32>, vector<8x16xf32> -> vector<8x16xf32>
    %cst_63 = arith.constant dense<0xFF800000> : vector<8xf32>
    %137 = vector.multi_reduction <maximumf>, %136, %cst_63 [1] : vector<8x16xf32> to vector<8xf32>
    %138 = vector.shape_cast %137 : vector<8xf32> to vector<8x1xf32>
    %139 = vector.broadcast %138 : vector<8x1xf32> to vector<8x16xf32>
    %140 = arith.subf %136, %139 : vector<8x16xf32>
    %141 = math.exp %140 : vector<8x16xf32>
    %cst_64 = arith.constant dense<0.000000e+00> : vector<8xf32>
    %142 = vector.multi_reduction <add>, %141, %cst_64 [1] : vector<8x16xf32> to vector<8xf32>
    %143 = vector.shape_cast %142 : vector<8xf32> to vector<8x1xf32>
    %144 = tpu.reciprocal %143 {approx = true} : vector<8x1xf32> -> vector<8x1xf32>
    %145 = vector.broadcast %144 : vector<8x1xf32> to vector<8x16xf32>
    %146 = arith.mulf %141, %145 : vector<8x16xf32>
    %147 = vector.extract_strided_slice %26 {offsets = [0, 112], sizes = [16, 16], strides = [1, 1]} : vector<16x128xf32> to vector<16x16xf32>
    %cst_65 = arith.constant dense<0.000000e+00> : vector<8x16xf32>
    %148 = tpu.matmul %146, %147, %cst_65 {dimension_numbers = #tpu.dot_dimension_numbers<[1], [0], [0], [1], [0, 0, 1, 1], [], []>} : vector<8x16xf32>, vector<16x16xf32>, vector<8x16xf32> -> vector<8x16xf32>
    %149 = tpu.concatenate %43, %58, %73, %88, %103, %118, %133, %148 in 1 : vector<8x16xf32>, vector<8x16xf32>, vector<8x16xf32>, vector<8x16xf32>, vector<8x16xf32>, vector<8x16xf32>, vector<8x16xf32>, vector<8x16xf32> -> vector<8x128xf32>
    %c0_66 = arith.constant 0 : index
    %c0_67 = arith.constant 0 : index
    %150 = vector.load %arg10[%c0_66, %c0_67] : memref<128x128xf32, #tpu.memory_space<vmem>>, vector<128x128xf32>
    %cst_68 = arith.constant dense<0.000000e+00> : vector<8x128xf32>
    %151 = tpu.matmul %149, %150, %cst_68 {dimension_numbers = #tpu.dot_dimension_numbers<[1], [1], [0], [0], [0, 0, 1, 0], [], []>} : vector<8x128xf32>, vector<128x128xf32>, vector<8x128xf32> -> vector<8x128xf32>
    %c0_69 = arith.constant 0 : index
    %c0_70 = arith.constant 0 : index
    %152 = vector.load %arg14[%c0_69, %c0_70] : memref<1x128xf32, #tpu.memory_space<vmem>>, vector<1x128xf32>
    %153 = vector.broadcast %152 : vector<1x128xf32> to vector<8x128xf32>
    %154 = arith.addf %151, %153 : vector<8x128xf32>
    %c0_71 = arith.constant 0 : index
    %c0_72 = arith.constant 0 : index
    %c0_73 = arith.constant 0 : index
    %c0_74 = arith.constant 0 : index
    %155 = vector.load %arg6[%c0_71, %c0_72, %c0_73, %c0_74] : memref<8x1x1x128xf32, #tpu.memory_space<vmem>>, vector<8x1x1x128xf32>
    %156 = vector.shape_cast %155 : vector<8x1x1x128xf32> to vector<8x128xf32>
    %157 = arith.addf %156, %154 : vector<8x128xf32>
    %cst_75 = arith.constant dense<0.000000e+00> : vector<8xf32>
    %158 = vector.multi_reduction <add>, %157, %cst_75 [1] : vector<8x128xf32> to vector<8xf32>
    %159 = vector.shape_cast %158 : vector<8xf32> to vector<8x1xf32>
    %cst_76 = arith.constant 1.280000e+02 : f32
    %160 = vector.broadcast %cst_76 : f32 to vector<8x1xf32>
    %161 = arith.divf %159, %160 : vector<8x1xf32>
    %162 = vector.broadcast %161 : vector<8x1xf32> to vector<8x128xf32>
    %163 = arith.subf %157, %162 : vector<8x128xf32>
    %164 = arith.mulf %163, %163 : vector<8x128xf32>
    %cst_77 = arith.constant dense<0.000000e+00> : vector<8xf32>
    %165 = vector.multi_reduction <add>, %164, %cst_77 [1] : vector<8x128xf32> to vector<8xf32>
    %166 = vector.shape_cast %165 : vector<8xf32> to vector<8x1xf32>
    %cst_78 = arith.constant 1.280000e+02 : f32
    %167 = vector.broadcast %cst_78 : f32 to vector<8x1xf32>
    %168 = arith.divf %166, %167 : vector<8x1xf32>
    %169 = vector.broadcast %161 : vector<8x1xf32> to vector<8x128xf32>
    %170 = arith.subf %157, %169 : vector<8x128xf32>
    %cst_79 = arith.constant 9.99999974E-6 : f32
    %171 = vector.broadcast %cst_79 : f32 to vector<8x1xf32>
    %172 = arith.addf %168, %171 : vector<8x1xf32>
    %173 = math.rsqrt %172 : vector<8x1xf32>
    %174 = vector.broadcast %173 : vector<8x1xf32> to vector<8x128xf32>
    %175 = arith.mulf %170, %174 : vector<8x128xf32>
    %c0_80 = arith.constant 0 : index
    %c0_81 = arith.constant 0 : index
    %176 = vector.load %arg15[%c0_80, %c0_81] : memref<1x128xf32, #tpu.memory_space<vmem>>, vector<1x128xf32>
    %177 = vector.broadcast %176 : vector<1x128xf32> to vector<8x128xf32>
    %178 = arith.mulf %175, %177 : vector<8x128xf32>
    %c0_82 = arith.constant 0 : index
    %c0_83 = arith.constant 0 : index
    %179 = vector.load %arg16[%c0_82, %c0_83] : memref<1x128xf32, #tpu.memory_space<vmem>>, vector<1x128xf32>
    %180 = vector.broadcast %179 : vector<1x128xf32> to vector<8x128xf32>
    %181 = arith.addf %178, %180 : vector<8x128xf32>
    %c0_84 = arith.constant 0 : index
    %c0_85 = arith.constant 0 : index
    %c0_86 = arith.constant 0 : index
    %c0_87 = arith.constant 0 : index
    %182 = vector.load %arg17[%c0_84, %c0_85, %c0_86, %c0_87] : memref<8x1x1x128xf32, #tpu.memory_space<vmem>>, vector<8x1x1x128xf32>
    %183 = vector.shape_cast %182 : vector<8x1x1x128xf32> to vector<8x128xf32>
    %184 = vector.shape_cast %181 : vector<8x128xf32> to vector<8x1x1x128xf32>
    tpu.vector_store %arg17[%c0_84, %c0_85, %c0_86, %c0_87], %184 {strides = array<i32>} : memref<8x1x1x128xf32, #tpu.memory_space<vmem>>, vector<8x1x1x128xf32>,
    return
  }
  func.func @transform_0(%arg0: i32) -> (i32, i32, i32, i32) {
    %c0_i32 = arith.constant 0 : i32
    %c0_i32_0 = arith.constant 0 : i32
    %c0_i32_1 = arith.constant 0 : i32
    %c0_i32_2 = arith.constant 0 : i32
    return %c0_i32, %arg0, %c0_i32_0, %c0_i32_1 : i32, i32, i32, i32
  }
  func.func @transform_1(%arg0: i32) -> (i32, i32, i32, i32) {
    %c0_i32 = arith.constant 0 : i32
    %c0_i32_0 = arith.constant 0 : i32
    %c0_i32_1 = arith.constant 0 : i32
    %c0_i32_2 = arith.constant 0 : i32
    return %c0_i32, %arg0, %c0_i32_0, %c0_i32_1 : i32, i32, i32, i32
  }
  func.func @transform_2(%arg0: i32) -> (i32, i32, i32, i32) {
    %c0_i32 = arith.constant 0 : i32
    %c0_i32_0 = arith.constant 0 : i32
    %c0_i32_1 = arith.constant 0 : i32
    %c0_i32_2 = arith.constant 0 : i32
    return %c0_i32, %arg0, %c0_i32_0, %c0_i32_1 : i32, i32, i32, i32
  }
  func.func @transform_3(%arg0: i32) -> (i32, i32, i32, i32) {
    %c0_i32 = arith.constant 0 : i32
    %c0_i32_0 = arith.constant 0 : i32
    %c0_i32_1 = arith.constant 0 : i32
    %c0_i32_2 = arith.constant 0 : i32
    return %c0_i32, %arg0, %c0_i32_0, %c0_i32_1 : i32, i32, i32, i32
  }
  func.func @transform_4(%arg0: i32) -> (i32, i32, i32, i32) {
    %c0_i32 = arith.constant 0 : i32
    %c0_i32_0 = arith.constant 0 : i32
    %c0_i32_1 = arith.constant 0 : i32
    %c0_i32_2 = arith.constant 0 : i32
    return %c0_i32, %arg0, %c0_i32_0, %c0_i32_1 : i32, i32, i32, i32
  }
  func.func @transform_5(%arg0: i32) -> (i32, i32, i32, i32) {
    %c0_i32 = arith.constant 0 : i32
    %c0_i32_0 = arith.constant 0 : i32
    %c0_i32_1 = arith.constant 0 : i32
    %c0_i32_2 = arith.constant 0 : i32
    return %c0_i32, %arg0, %c0_i32_0, %c0_i32_1 : i32, i32, i32, i32
  }
  func.func @transform_6(%arg0: i32) -> (i32, i32) {
    %c0_i32 = arith.constant 0 : i32
    %c0_i32_0 = arith.constant 0 : i32
    %c0_i32_1 = arith.constant 0 : i32
    return %c0_i32, %c0_i32_0 : i32, i32
  }
  func.func @transform_7(%arg0: i32) -> (i32, i32) {
    %c0_i32 = arith.constant 0 : i32
    %c0_i32_0 = arith.constant 0 : i32
    %c0_i32_1 = arith.constant 0 : i32
    return %c0_i32, %c0_i32_0 : i32, i32
  }
  func.func @transform_8(%arg0: i32) -> (i32, i32) {
    %c0_i32 = arith.constant 0 : i32
    %c0_i32_0 = arith.constant 0 : i32
    %c0_i32_1 = arith.constant 0 : i32
    return %c0_i32, %c0_i32_0 : i32, i32
  }
  func.func @transform_9(%arg0: i32) -> (i32, i32) {
    %c0_i32 = arith.constant 0 : i32
    %c0_i32_0 = arith.constant 0 : i32
    %c0_i32_1 = arith.constant 0 : i32
    return %c0_i32, %c0_i32_0 : i32, i32
  }
  func.func @transform_10(%arg0: i32) -> (i32, i32) {
    %c0_i32 = arith.constant 0 : i32
    %c0_i32_0 = arith.constant 0 : i32
    %c0_i32_1 = arith.constant 0 : i32
    return %c0_i32, %c0_i32_0 : i32, i32
  }
  func.func @transform_11(%arg0: i32) -> (i32, i32) {
    %c0_i32 = arith.constant 0 : i32
    %c0_i32_0 = arith.constant 0 : i32
    %c0_i32_1 = arith.constant 0 : i32
    return %c0_i32, %c0_i32_0 : i32, i32
  }
  func.func @transform_12(%arg0: i32) -> (i32, i32) {
    %c0_i32 = arith.constant 0 : i32
    %c0_i32_0 = arith.constant 0 : i32
    %c0_i32_1 = arith.constant 0 : i32
    return %c0_i32, %c0_i32_0 : i32, i32
  }
  func.func @transform_13(%arg0: i32) -> (i32, i32) {
    %c0_i32 = arith.constant 0 : i32
    %c0_i32_0 = arith.constant 0 : i32
    %c0_i32_1 = arith.constant 0 : i32
    return %c0_i32, %c0_i32_0 : i32, i32
  }
  func.func @transform_14(%arg0: i32) -> (i32, i32) {
    %c0_i32 = arith.constant 0 : i32
    %c0_i32_0 = arith.constant 0 : i32
    %c0_i32_1 = arith.constant 0 : i32
    return %c0_i32, %c0_i32_0 : i32, i32
  }
  func.func @transform_15(%arg0: i32) -> (i32, i32) {
    %c0_i32 = arith.constant 0 : i32
    %c0_i32_0 = arith.constant 0 : i32
    %c0_i32_1 = arith.constant 0 : i32
    return %c0_i32, %c0_i32_0 : i32, i32
  }
  func.func @transform_16(%arg0: i32) -> (i32, i32, i32, i32) {
    %c0_i32 = arith.constant 0 : i32
    %c0_i32_0 = arith.constant 0 : i32
    %c0_i32_1 = arith.constant 0 : i32
    %c0_i32_2 = arith.constant 0 : i32
    return %c0_i32, %arg0, %c0_i32_0, %c0_i32_1 : i32, i32, i32, i32
  }
}

</mosaic_0001>

<bundles_post_ra>
// kernel: referring_cross_attention.1
= control target key start
LH: loop header
LB: loop body
LE: loop exit
PB: predicated region body
PF: predicated region fallthrough
CT: control target
= control target key end

     0   :  { %s5989_s0 = inlined_call_operand.hbm [shape: f32[8,2,1,128], index: 0, kind: input, shape index: {}]   ;;  %s5990_s1 = inlined_call_operand.vmem [shape: f32[8,2,1,128], index: 1, kind: input, shape index: {}]   ;;  %s5991_s2 = inlined_call_operand.hbm [shape: f32[16,2,1,128], index: 2, kind: input, shape index: {}]   ;;  %s5992_s3 = inlined_call_operand.vmem [shape: f32[16,2,1,128], index: 3, kind: input, shape index: {}]   ;;  %s5993_s4 = inlined_call_operand.hbm [shape: f32[16,2,1,128], index: 4, kind: input, shape index: {}]   ;;  %s5994_s5 = inlined_call_operand.hbm [shape: f32[8,2,1,128], index: 5, kind: input, shape index: {}]   ;;  %s5995_s6 = inlined_call_operand.hbm [shape: f32[128,128], index: 6, kind: input, shape index: {}]   ;;  %s5996_s7 = inlined_call_operand.hbm [shape: f32[128,128], index: 7, kind: input, shape index: {}]   ;;  %s5997_s8 = inlined_call_operand.hbm [shape: f32[128,128], index: 8, kind: input, shape index: {}]   ;;  %s5998_s9 = inlined_call_operand.hbm [shape: f32[128,128], index: 9, kind: input, shape index: {}]   ;;  %s5999_s10 = inlined_call_operand.vmem [shape: f32[1,128], index: 10, kind: input, shape index: {}]   ;;  %s6000_s11 = inlined_call_operand.hbm [shape: f32[1,128], index: 11, kind: input, shape index: {}]   ;;  %s6001_s12 = inlined_call_operand.hbm [shape: f32[1,128], index: 12, kind: input, shape index: {}]   ;;  %s6002_s13 = inlined_call_operand.hbm [shape: f32[1,128], index: 13, kind: input, shape index: {}]   ;;  %s6003_s14 = inlined_call_operand.hbm [shape: f32[1,128], index: 14, kind: input, shape index: {}]   ;;  %s6004_s15 = inlined_call_operand.hbm [shape: f32[1,128], index: 15, kind: input, shape index: {}]   ;;  %s6005_s16 = inlined_call_operand.hbm [shape: f32[8,2,1,128], index: 16, kind: output, shape index: {}]  }
   0x1   :  { %6031 = sst [smem:[#allocation42_spill]] %s5989_s0 }
   0x2   :  { %6032 = sst [smem:[#allocation43_spill]] %s5990_s1 }
   0x3   :  { %6033 = sst [smem:[#allocation44_spill]] %s5991_s2 }
   0x4   :  { %6034 = sst [smem:[#allocation45_spill]] %s5992_s3 }
   0x5   :  { %6035 = sst [smem:[#allocation46_spill]] %s5995_s6 }
   0x6   :  { %6036 = sst [smem:[#allocation47_spill]] %s5996_s7 }
   0x7   :  { %6037 = sst [smem:[#allocation48_spill]] %s5999_s10 }
   0x8   :  { %6038 = sst [smem:[#allocation49_spill]] %s6005_s16 }
   0x9   :  { %21 = vsyncpa [#allocation3], 0 }
   0xa   :  { %23 = vsyncpa [#allocation3 + $0x1], 0 }
   0xb   :  { %24 = vsyncpa [#allocation7], 0 }
   0xc   :  { %26 = vsyncpa [#allocation7 + $0x1], 0 }
   0xd   :  { %27 = vsyncpa [#allocation11], 0 }
   0xe   :  { %29 = vsyncpa [#allocation11 + $0x1], 0 }
   0xf   :  { %30 = vsyncpa [#allocation14], 0 }
  0x10   :  { %31 = vsyncpa [#allocation17], 0 }
  0x11   :  { %32 = vsyncpa [#allocation20], 0 }
  0x12   :  { %33 = vsyncpa [#allocation23], 0 }
  0x13   :  { %34 = vsyncpa [#allocation4], 0 }
  0x14   :  { %36 = vsyncpa [#allocation4 + $0x1], 0  ;;  %s5069_s21 = smov 0   ;;  %s5071_s22 = smov 0  }
  0x15   :  { %s5073_s23 = smov 0   ;;  %s5075_s24 = smov 0  }
  0x16 LB: > { %6039 = sst [smem:[#allocation35_spill]] %s4940_s21  ;;  %s5090_s25 = sadd.s32 4294967295, %s4952_s24   ;;  %s4952_s24 = sphi %s5075_s24, %s6089_s24   ;;  %s4948_s23 = sphi %s5073_s23, %s6093_s23   ;;  %s4944_s22 = sphi %s5071_s22, %s6092_s22   ;;  %s4940_s21 = sphi %s5069_s21, %s6091_s21  }
  0x17   : > { %6040 = sst [smem:[#allocation36_spill]] %s5090_s25  ;;  %s3883_s26 = sadd.s32 4294967294, %s4952_s24  }
  0x18   : > { %s5094_s27 = sadd.s32 1, %s4952_s24   ;;  %s49_s28 = sadd.s32 1, %s4948_s23 }
  0x19   : > { %6041 = sst [smem:[#allocation37_spill]] %s5094_s27  ;;  %s46_s29 = ssub.s32 %s4952_s24, %s5094_s27 }
  0x1a   : > { %p56_p0 = scmp.ne.s32.totalorder %s4948_s23, %s4944_s22  ;;  %p47_p1 = scmp.eq.s32.totalorder %s46_s29, 0 }
  0x1b   : > { %p57_p2 = scmp.eq.s32.totalorder %s4952_s24, 0  ;;  %p62_p3 = scmp.ne.s32.totalorder %s4944_s22, %s4940_s21 }
  0x1c   : > { %p6011_p4 = scmp.eq.s32.totalorder %s5090_s25, 0  ;;  %p426_p7 = scmp.eq.s32.totalorder %s5090_s25, 1 }
  0x1d   : > { %s5106_s30 = scalar_select %p47_p1, %s4948_s23, %s49_s28  }
  0x1e   : > { %p5108_p5 = por %p57_p2, %p56_p0  ;;  %p5114_p6 = por %p6011_p4, %p62_p3 }
  0x1f   : > { %6042 = sst [smem:[#allocation38_spill]] %s5106_s30  ;;  %p432_p8 = scmp.eq.s32.totalorder %s3883_s26, 1 }
  0x20   : > { %s6044_s17 = scalar_select %p5114_p6, 1, 0 }
  0x21   : > { %p3884_p9 = scmp.ge.s32.totalorder %s4952_s24, 1  ;;  %p439_p10 = scmp.lt.s32.totalorder %s4952_s24, 3 }
  0x22   : > { %6045 = sst [smem:[#allocation39_spill]] %s6044_s17  ;;  %p5121_p11 = por %p426_p7, %p56_p0 }
  0x23   : > { %p5125_p12 = por %p432_p8, %p62_p3  ;;  %p5129_p13 = pnand %p3884_p9, %p439_p10 }
  0x24   : > { %s6046_s18 = scalar_select %p5121_p11, 1, 0 }
  0x25   : > { %s6048_s19 = scalar_select %p5125_p12, 1, 0 }
  0x26   : > { %6047 = sst [smem:[#allocation40_spill]] %s6046_s18  ;;  %p4380_p1 = pneg %p5129_p13 }
  0x27   : > { %6049 = sst [smem:[#allocation41_spill]] %s6048_s19  ;;  %s4954_s28 = smov [#allocation13]  }
  0x28   : > { %s6050_s20 = scalar_select %p5129_p13, 1, 0 }
  0x29   : > { %s464_s29 = sshll.u32 %s4954_s28, 4  ;;  %p5137_p2 = pnand %p4380_p1, %p6011_p4  ;;  %s465_s29 = int_to_ptr.vmem [resolvable:$true] %s464_s29 }
  0x2a   : > { %s4955_s30 = smov [#allocation16]   ;;  %s4533_s21 = scalar_lea.vmem %s465_s29, 2048 }
  0x2b   : > { %s490_s27 = sshll.u32 %s4955_s30, 4  ;;  %p5143_p0 = pneg %p5137_p2  ;;  %s491_s27 = int_to_ptr.vmem [resolvable:$true] %s490_s27 }
  0x2c   : > { %p4534_p3 = scmp.ne.s32.totalorder %s465_s29, %s4533_s21  ;;  %p4541_p9 = scmp.lt.s32.totalorder %s465_s29, %s465_s29 }
  0x2d   : > { %p4542_p10 = scmp.lt.s32.totalorder %s4533_s21, %s4533_s21 }
  0x2e   : > { %p4536_p7 = pnand %p4534_p3, %p5143_p0 }
  0x2f   : > { %p4543_p1 = por %p4542_p10, %p4541_p9 }
  0x30   : > { %p4537_p8 = pneg %p4536_p7 }
  0x32   : > { %p4544_p4 = pnand %p4543_p1, %p4537_p8 }
  0x34   : > { %4547 = shalt.err (!%p4544_p4)
}
  0x35   : > { %s6022_s28 = smov 128   ;;  %s4957_s30 = smov 8  }
  0x36   : > { %s6053_s7 = sld [smem:[#allocation47_spill]]  ;;  %s4559_s10 = scalar_lea.vmem %s491_s27, 2048 }
  0x37   : > { %p4560_p3 = scmp.ne.s32.totalorder %s491_s27, %s4559_s10  ;;  %p4567_p9 = scmp.lt.s32.totalorder %s491_s27, %s491_s27 }
  0x38   : > { %p4568_p8 = scmp.lt.s32.totalorder %s4559_s10, %s4559_s10 }
  0x39   : > { %p4562_p7 = pnand %p4560_p3, %p5143_p0 }
  0x3a   : > { %p4569_p4 = por %p4568_p8, %p4567_p9 }
  0x3b   : > { %p4563_p12 = pneg %p4562_p7 }
  0x3c   : > { %4386 = dma.hbm_to_vmem [thread:$0]  (!%p5137_p2), %s6053_s7, 2048, %s465_s29, [#allocation14], %s6022_s28, %s6022_s28, %s4957_s30  }
  0x3d   : > { %p4570_p10 = pnand %p4569_p4, %p4563_p12 }
  0x3f   : > { %4573 = shalt.err (!%p4570_p10)
}
  0x40   : > { %4392 = dma.hbm_to_vmem [thread:$0]  (!%p5137_p2), %s5998_s9, 2048, %s491_s27, [#allocation17], %s6022_s28, %s6022_s28, %s4957_s30  }
  0x41   : > { %s4958_s16 = smov [#allocation19]   ;;  %s4959_s29 = smov [#allocation22]  }
  0x42   : > { %s518_s18 = sshll.u32 %s4958_s16, 4  ;;  %s540_s7 = sshll.u32 %s4959_s29, 4  ;;  %s519_s18 = int_to_ptr.vmem [resolvable:$true] %s518_s18  ;;  %s541_s7 = int_to_ptr.vmem [resolvable:$true] %s540_s7 }
  0x43   : > { %s4585_s17 = scalar_lea.vmem %s519_s18, 16  ;;  %s4592_s10 = scalar_lea.vmem %s519_s18, 32 }
  0x44   : > { %p4586_p1 = scmp.ne.s32.totalorder %s519_s18, %s4585_s17  ;;  %p4593_p7 = scmp.lt.s32.totalorder %s519_s18, %s519_s18 }
  0x45   : > { %p4594_p9 = scmp.lt.s32.totalorder %s4592_s10, %s4585_s17 }
  0x46   : > { %p4588_p12 = pnand %p4586_p1, %p5143_p0 }
  0x47   : > { %p4595_p8 = por %p4594_p9, %p4593_p7 }
  0x48   : > { %p4589_p3 = pneg %p4588_p12 }
  0x4a   : > { %p4596_p4 = pnand %p4595_p8, %p4589_p3 }
  0x4c   : > { %4599 = shalt.err (!%p4596_p4)
}
  0x4d   : > { %4398 = dma.hbm_to_vmem [thread:$0]  (!%p5137_p2), %s6001_s12, 16, %s519_s18, [#allocation20]  }
  0x4e   : > { %s4611_s21 = scalar_lea.vmem %s541_s7, 16  ;;  %s4618_s16 = scalar_lea.vmem %s541_s7, 32 }
  0x4f   : > { %p4612_p10 = scmp.ne.s32.totalorder %s541_s7, %s4611_s21  ;;  %p4619_p12 = scmp.lt.s32.totalorder %s541_s7, %s541_s7 }
  0x50   : > { %p4620_p6 = scmp.lt.s32.totalorder %s4618_s16, %s4611_s21 }
  0x51   : > { %p4614_p11 = pnand %p4612_p10, %p5143_p0 }
  0x52   : > { %p4621_p13 = por %p4620_p6, %p4619_p12 }
  0x53   : > { %p4615_p1 = pneg %p4614_p11 }
  0x55   : > { %p4622_p7 = pnand %p4621_p13, %p4615_p1 }
  0x57   : > { %4625 = shalt.err (!%p4622_p7)
}
  0x58   : > { %4404 = dma.hbm_to_vmem [thread:$0]  (!%p5137_p2), %s6003_s14, 16, %s541_s7, [#allocation23]  }
  0x59   : > { %s4960_s18 = smov [#allocation12]   ;;  %s4961_s25 = smov [#allocation15]  }
  0x5a   : > { %s451_s10 = sshll.u32 %s4960_s18, 4  ;;  %s477_s27 = sshll.u32 %s4961_s25, 4  ;;  %s452_s10 = int_to_ptr.vmem [resolvable:$true] %s451_s10  ;;  %s478_s27 = int_to_ptr.vmem [resolvable:$true] %s477_s27 }
  0x5b   : > { %s4637_s28 = scalar_lea.vmem %s452_s10, 2048  ;;  %p4645_p6 = scmp.lt.s32.totalorder %s452_s10, %s452_s10 }
  0x5c   : > { %p4638_p11 = scmp.ne.s32.totalorder %s452_s10, %s4637_s28  ;;  %p4646_p13 = scmp.lt.s32.totalorder %s4637_s28, %s4637_s28 }
  0x5e   : > { %p4640_p3 = pnand %p4638_p11, %p5143_p0  ;;  %p4647_p8 = por %p4646_p13, %p4645_p6 }
  0x60   : > { %p4641_p9 = pneg %p4640_p3 }
  0x62   : > { %p4648_p4 = pnand %p4647_p8, %p4641_p9 }
  0x64   : > { %4651 = shalt.err (!%p4648_p4)
}
  0x65   : > { %s6054_s21 = smov 128   ;;  %s6055_s6 = sld [smem:[#allocation46_spill]] }
  0x66   : > { %s4663_s17 = scalar_lea.vmem %s478_s27, 2048  ;;  %p4671_p7 = scmp.lt.s32.totalorder %s478_s27, %s478_s27 }
  0x67   : > { %p4664_p10 = scmp.ne.s32.totalorder %s478_s27, %s4663_s17  ;;  %p4672_p11 = scmp.lt.s32.totalorder %s4663_s17, %s4663_s17 }
  0x69   : > { %p4666_p1 = pnand %p4664_p10, %p5143_p0  ;;  %p4673_p3 = por %p4672_p11, %p4671_p7 }
  0x6b   : > { %4383 = dma.hbm_to_vmem [thread:$0]  (!%p5137_p2), %s6055_s6, 2048, %s452_s10, [#allocation11], %s6054_s21, %s6054_s21, %s4957_s30  }
  0x6c   : > { %p4667_p12 = pneg %p4666_p1 }
  0x6e   : > { %p4674_p9 = pnand %p4673_p3, %p4667_p12 }
  0x70   : > { %4677 = shalt.err (!%p4674_p9)
}
  0x71   : > { %4389 = dma.hbm_to_vmem [thread:$0]  (!%p5137_p2), %s5997_s8, 2048, %s478_s27, [#allocation14], %s6054_s21, %s6054_s21, %s4957_s30  }
  0x72   : > { %s4962_s18 = smov [#allocation18]   ;;  %s4963_s25 = smov [#allocation21]  }
  0x73   : > { %s507_s10 = sshll.u32 %s4962_s18, 4  ;;  %s529_s7 = sshll.u32 %s4963_s25, 4  ;;  %s508_s10 = int_to_ptr.vmem [resolvable:$true] %s507_s10  ;;  %s530_s7 = int_to_ptr.vmem [resolvable:$true] %s529_s7 }
  0x74   : > { %s4689_s16 = scalar_lea.vmem %s508_s10, 16  ;;  %s4696_s17 = scalar_lea.vmem %s508_s10, 32 }
  0x75   : > { %p4690_p6 = scmp.ne.s32.totalorder %s508_s10, %s4689_s16  ;;  %p4697_p4 = scmp.lt.s32.totalorder %s508_s10, %s508_s10 }
  0x76   : > { %p4698_p10 = scmp.lt.s32.totalorder %s4696_s17, %s4689_s16 }
  0x77   : > { %p4692_p13 = pnand %p4690_p6, %p5143_p0 }
  0x78   : > { %p4699_p1 = por %p4698_p10, %p4697_p4 }
  0x79   : > { %p4693_p8 = pneg %p4692_p13 }
  0x7b   : > { %p4700_p12 = pnand %p4699_p1, %p4693_p8 }
  0x7d   : > { %4703 = shalt.err (!%p4700_p12)
}
  0x7e   : > { %4395 = dma.hbm_to_vmem [thread:$0]  (!%p5137_p2), %s6000_s11, 16, %s508_s10, [#allocation17]  }
  0x7f   : > { %s4715_s27 = scalar_lea.vmem %s530_s7, 16  ;;  %s4722_s21 = scalar_lea.vmem %s530_s7, 32 }
  0x80   : > { %p4716_p7 = scmp.ne.s32.totalorder %s530_s7, %s4715_s27  ;;  %p4723_p9 = scmp.lt.s32.totalorder %s530_s7, %s530_s7 }
  0x81   : > { %p4724_p6 = scmp.lt.s32.totalorder %s4722_s21, %s4715_s27 }
  0x82   : > { %p4718_p11 = pnand %p4716_p7, %p5143_p0 }
  0x83   : > { %p4725_p13 = por %p4724_p6, %p4723_p9 }
  0x84   : > { %p4719_p3 = pneg %p4718_p11 }
  0x86   : > { %p4726_p4 = pnand %p4725_p13, %p4719_p3 }
  0x88   : > { %4729 = shalt.err (!%p4726_p4)
}
  0x89   : > { %4401 = dma.hbm_to_vmem [thread:$0]  (!%p5137_p2), %s6002_s13, 16, %s530_s7, [#allocation20]  }
  0x8a   : > { %s4964_s10 = smov [#allocation24]  }
  0x8b   : > { %s551_s25 = sshll.u32 %s4964_s10, 4  ;;  %s552_s25 = int_to_ptr.vmem [resolvable:$true] %s551_s25 }
  0x8c   : > { %s4741_s16 = scalar_lea.vmem %s552_s25, 16  ;;  %s4748_s17 = scalar_lea.vmem %s552_s25, 32 }
  0x8d   : > { %p4742_p8 = scmp.ne.s32.totalorder %s552_s25, %s4741_s16  ;;  %p4749_p12 = scmp.lt.s32.totalorder %s552_s25, %s552_s25 }
  0x8e   : > { %p4750_p7 = scmp.lt.s32.totalorder %s4748_s17, %s4741_s16 }
  0x8f   : > { %p4744_p10 = pnand %p4742_p8, %p5143_p0 }
  0x90   : > { %p4751_p11 = por %p4750_p7, %p4749_p12 }
  0x91   : > { %p4745_p1 = pneg %p4744_p10 }
  0x93   : > { %p4752_p3 = pnand %p4751_p11, %p4745_p1 }
  0x95   : > { %4755 = shalt.err (!%p4752_p3)
}
  0x96   : > { %4407 = dma.hbm_to_vmem [thread:$0]  (!%p5137_p2), %s6004_s15, 16, %s552_s25, [#allocation23]  }
  0x97   : > { %p3894_p9 = scmp.ge.s32.totalorder %s4952_s24, 2 }
  0x98   : > { %s5226_s19 = sand.u32 (!%p3894_p9), 1, %s4948_s23   ;;  %s5229_s7 = sshll.u32 (!%p3894_p9), %s4952_s24, 4 }
  0x99   : > { %558 = sbr.rel (%p3894_p9) target bundleno = 293 (0x125), region = 56  ;;  %s5232_s26 = sshll.u32 (!%p3894_p9), %s5226_s19, 3 }
  0x9a   : > { %s6056_s29 = sld [smem:[#allocation42_spill]] (!%p3894_p9)  ;;  %s566_s10 = scalar_lea.vmem (!%p3894_p9), [#allocation2], %s5232_s26 }
  0x9b   : > { %s572_s25 = sshll.u32 (!%p3894_p9), %s566_s10, 4  ;;  %s5241_s25 = int_to_ptr.vmem [resolvable:$true] %s572_s25 }
  0xa0   : > { %s5238_s18 = scalar_lea.hbm %s6056_s29, %s5229_s7  ;;  %s4760_s27 = scalar_lea.hbm %s6056_s29, 256 }
  0xa1   : > { %s4756_s17 = scalar_lea.hbm %s5238_s18, 128  ;;  %p4761_p13 = scmp.lt.s32.totalorder %s5238_s18, %s6056_s29 }
  0xa2   : > { %p4757_p2 = scmp.ne.s32.totalorder %s5238_s18, %s4756_s17  ;;  %p4762_p4 = scmp.lt.s32.totalorder %s4760_s27, %s4756_s17 }
  0xa4   : > { %p4758_p0 = pnand %p4757_p2, %p5108_p5  ;;  %p4763_p8 = por %p4762_p4, %p4761_p13 }
  0xa6   : > { %p4759_p6 = pneg %p4758_p0 }
  0xa8   : > { %p4764_p10 = pnand %p4763_p8, %p4759_p6 }
  0xaa   : > { %4767 = shalt.err (!%p4764_p10)
}
  0xab   : > { %s4768_s10 = scalar_lea.vmem %s5241_s25, 128  ;;  %s4965_s16 = smov [#allocation2]  }
  0xac   : > { %p4769_p1 = scmp.ne.s32.totalorder %s5241_s25, %s4768_s10  ;;  %s4772_s28 = sshll.u32 %s4965_s16, 4  ;;  %s4773_s28 = int_to_ptr.vmem [resolvable:$false] %s4772_s28 }
  0xad   : > { %s4774_s30 = scalar_lea.vmem %s4773_s28, 256  ;;  %p4775_p11 = scmp.lt.s32.totalorder %s5241_s25, %s4773_s28 }
  0xae   : > { %p4770_p12 = pnand %p4769_p1, %p5108_p5  ;;  %p4776_p3 = scmp.lt.s32.totalorder %s4774_s30, %s4768_s10 }
  0xb0   : > { %p4771_p7 = pneg %p4770_p12  ;;  %p4777_p2 = por %p4776_p3, %p4775_p11 }
  0xb2   : > { %p4778_p0 = pnand %p4777_p2, %p4771_p7 }
  0xb4   : > { %4781 = shalt.err (!%p4778_p0)
}
  0xb5   : > { %s6024_s6 = smov 32   ;;  %s6026_s17 = smov 16  }
  0xb6   : > { %s6028_s27 = smov 1   ;;  %s6057_s21 = scalar_lea.sflag [#allocation3], %s5226_s19 }
  0xb7   : > { %4352 = dma.hbm_to_vmem [thread:$0]  (%p5108_p5), %s5238_s18, 128, %s5241_s25, %s6057_s21, %s6024_s6, %s6026_s17, %s6028_s27  }
  0xb8   : > { %581 = sbr.rel (!%p5108_p5) target bundleno = 197 (0xc5), region = 64  ;;  %s6058_s1 = sld [smem:[#allocation43_spill]] (%p5108_p5) }
  0xb9   : > { %s585_s30 = scalar_lea.vmem (%p5108_p5), [#allocation5], %s5232_s26 }
  0xbe   : > { %s586_s28 = scalar_lea.vmem %s6058_s1, %s4952_s24 }
  0xbf   : > { %v603_v0 = vld [vmem:[%s586_s28] sm:$0x1]  ;;  %v605_v1 = vld [vmem:[%s586_s28 + $0x2] sm:$0x1]  ;;  %v607_v2 = vld [vmem:[%s586_s28 + $0x4] sm:$0x1] }
  0xc0   : > { %604 = vst [vmem:[%s585_s30] sm:$0x1] %v603_v0  ;;  %606 = vst [vmem:[%s585_s30 + $0x1] sm:$0x1] %v605_v1  ;;  %v609_v3 = vld [vmem:[%s586_s28 + $0x6] sm:$0x1] }
  0xc1   : > { %608 = vst [vmem:[%s585_s30 + $0x2] sm:$0x1] %v607_v2  ;;  %v611_v4 = vld [vmem:[%s586_s28 + $0x8] sm:$0x1]  ;;  %v613_v5 = vld [vmem:[%s586_s28 + $0xa] sm:$0x1] }
  0xc2   : > { %610 = vst [vmem:[%s585_s30 + $0x3] sm:$0x1] %v609_v3  ;;  %612 = vst [vmem:[%s585_s30 + $0x4] sm:$0x1] %v611_v4  ;;  %v615_v6 = vld [vmem:[%s586_s28 + $0xc] sm:$0x1] }
  0xc3   : > { %614 = vst [vmem:[%s585_s30 + $0x5] sm:$0x1] %v613_v5  ;;  %v617_v7 = vld [vmem:[%s586_s28 + $0xe] sm:$0x1]  ;;  %616 = vst [vmem:[%s585_s30 + $0x6] sm:$0x1] %v615_v6 }
  0xc4   : > { %618 = vst [vmem:[%s585_s30 + $0x7] sm:$0x1] %v617_v7 }
  0xc5 PF: > { %s6030_s18 = sand.u32 1, %s4952_s24   ;;  %s5278_s25 = sshll.u32 %s5226_s19, 4 }
  0xc6   : > { %s6059_s2 = sld [smem:[#allocation44_spill]]  ;;  %s663_s28 = scalar_lea.vmem [#allocation6], %s5278_s25 }
  0xc7   : > { %s669_s30 = sshll.u32 %s663_s28, 4  ;;  %s5291_s6 = scalar_lea.sflag [#allocation7], %s6030_s18  ;;  %s5287_s30 = int_to_ptr.vmem [resolvable:$true] %s669_s30 }
  0xcc   : > { %s5284_s10 = scalar_lea.hbm %s6059_s2, %s5229_s7  ;;  %s4786_s16 = scalar_lea.hbm %s6059_s2, 512 }
  0xcd   : > { %s4782_s17 = scalar_lea.hbm %s5284_s10, 256  ;;  %p4787_p8 = scmp.lt.s32.totalorder %s5284_s10, %s6059_s2 }
  0xce   : > { %p4783_p6 = scmp.ne.s32.totalorder %s5284_s10, %s4782_s17  ;;  %p4788_p10 = scmp.lt.s32.totalorder %s4786_s16, %s4782_s17 }
  0xd0   : > { %p4784_p13 = pnand %p4783_p6, %p5108_p5  ;;  %p4789_p1 = por %p4788_p10, %p4787_p8 }
  0xd2   : > { %p4785_p4 = pneg %p4784_p13 }
  0xd4   : > { %p4790_p12 = pnand %p4789_p1, %p4785_p4 }
  0xd6   : > { %4793 = shalt.err (!%p4790_p12)
}
  0xd7   : > { %s4794_s28 = scalar_lea.vmem %s5287_s30, 256  ;;  %s4969_s18 = smov [#allocation6]  }
  0xd8   : > { %p4795_p7 = scmp.ne.s32.totalorder %s5287_s30, %s4794_s28  ;;  %s4798_s19 = sshll.u32 %s4969_s18, 4  ;;  %s4799_s19 = int_to_ptr.vmem [resolvable:$false] %s4798_s19 }
  0xd9   : > { %s4800_s21 = scalar_lea.vmem %s4799_s19, 512  ;;  %p4801_p2 = scmp.lt.s32.totalorder %s5287_s30, %s4799_s19 }
  0xda   : > { %p4796_p11 = pnand %p4795_p7, %p5108_p5  ;;  %p4802_p0 = scmp.lt.s32.totalorder %s4800_s21, %s4794_s28 }
  0xdc   : > { %p4797_p3 = pneg %p4796_p11  ;;  %p4803_p6 = por %p4802_p0, %p4801_p2 }
  0xde   : > { %p4804_p13 = pnand %p4803_p6, %p4797_p3 }
  0xe0   : > { %4807 = shalt.err (!%p4804_p13)
}
  0xe1   : > { %s6060_s1 = smov 1   ;;  %s6061_s17 = smov 16  }
  0xe2   : > { %s6062_s27 = smov 32   ;;  %678 = sbr.rel (!%p5108_p5) target bundleno = 246 (0xf6), region = 109 }
  0xe3   : > { %4353 = dma.hbm_to_vmem [thread:$0]  (%p5108_p5), %s5284_s10, 256, %s5287_s30, %s5291_s6, %s6062_s27, %s6061_s17, %s6060_s1  }
  0xe4   : > { %s6063_s3 = sld [smem:[#allocation45_spill]] (%p5108_p5)  ;;  %s682_s10 = scalar_lea.vmem (%p5108_p5), [#allocation8], %s5278_s25 }
  0xea   : > { %s5323_s28 = scalar_lea.vmem %s6063_s3, %s4952_s24 }
  0xeb   : > { %v700_v8 = vld [vmem:[%s5323_s28] sm:$0x1]  ;;  %v702_v9 = vld [vmem:[%s5323_s28 + $0x2] sm:$0x1]  ;;  %v704_v10 = vld [vmem:[%s5323_s28 + $0x4] sm:$0x1] }
  0xec   : > { %701 = vst [vmem:[%s682_s10] sm:$0x1] %v700_v8  ;;  %703 = vst [vmem:[%s682_s10 + $0x1] sm:$0x1] %v702_v9  ;;  %v706_v11 = vld [vmem:[%s5323_s28 + $0x6] sm:$0x1] }
  0xed   : > { %705 = vst [vmem:[%s682_s10 + $0x2] sm:$0x1] %v704_v10  ;;  %v708_v12 = vld [vmem:[%s5323_s28 + $0x8] sm:$0x1]  ;;  %v710_v13 = vld [vmem:[%s5323_s28 + $0xa] sm:$0x1] }
  0xee   : > { %707 = vst [vmem:[%s682_s10 + $0x3] sm:$0x1] %v706_v11  ;;  %709 = vst [vmem:[%s682_s10 + $0x4] sm:$0x1] %v708_v12  ;;  %v712_v14 = vld [vmem:[%s5323_s28 + $0xc] sm:$0x1] }
  0xef   : > { %711 = vst [vmem:[%s682_s10 + $0x5] sm:$0x1] %v710_v13  ;;  %v714_v15 = vld [vmem:[%s5323_s28 + $0xe] sm:$0x1]  ;;  %v716_v16 = vld [vmem:[%s5323_s28 + $0x10] sm:$0x1] }
  0xf0   : > { %713 = vst [vmem:[%s682_s10 + $0x6] sm:$0x1] %v712_v14  ;;  %715 = vst [vmem:[%s682_s10 + $0x7] sm:$0x1] %v714_v15  ;;  %v718_v17 = vld [vmem:[%s5323_s28 + $0x12] sm:$0x1] }
  0xf1   : > { %717 = vst [vmem:[%s682_s10 + $0x8] sm:$0x1] %v716_v16  ;;  %v720_v18 = vld [vmem:[%s5323_s28 + $0x14] sm:$0x1]  ;;  %v722_v19 = vld [vmem:[%s5323_s28 + $0x16] sm:$0x1] }
  0xf2   : > { %719 = vst [vmem:[%s682_s10 + $0x9] sm:$0x1] %v718_v17  ;;  %721 = vst [vmem:[%s682_s10 + $0xa] sm:$0x1] %v720_v18  ;;  %v724_v20 = vld [vmem:[%s5323_s28 + $0x18] sm:$0x1] }
  0xf3   : > { %723 = vst [vmem:[%s682_s10 + $0xb] sm:$0x1] %v722_v19  ;;  %v726_v21 = vld [vmem:[%s5323_s28 + $0x1a] sm:$0x1]  ;;  %v728_v22 = vld [vmem:[%s5323_s28 + $0x1c] sm:$0x1] }
  0xf4   : > { %725 = vst [vmem:[%s682_s10 + $0xc] sm:$0x1] %v724_v20  ;;  %727 = vst [vmem:[%s682_s10 + $0xd] sm:$0x1] %v726_v21  ;;  %v730_v23 = vld [vmem:[%s5323_s28 + $0x1e] sm:$0x1] }
  0xf5   : > { %729 = vst [vmem:[%s682_s10 + $0xe] sm:$0x1] %v728_v22  ;;  %731 = vst [vmem:[%s682_s10 + $0xf] sm:$0x1] %v730_v23 }
  0xf6 PF: > { %s5346_s21 = scalar_lea.hbm %s5993_s4, %s5229_s7  ;;  %s792_s1 = scalar_lea.vmem [#allocation9], %s5278_s25 }
  0xf7   : > { %s798_s17 = sshll.u32 %s792_s1, 4  ;;  %s4808_s27 = scalar_lea.hbm %s5346_s21, 256  ;;  %s799_s17 = int_to_ptr.vmem [resolvable:$true] %s798_s17 }
  0xf8   : > { %p4809_p4 = scmp.ne.s32.totalorder %s5346_s21, %s4808_s27  ;;  %s4812_s28 = scalar_lea.hbm %s5993_s4, 512 }
  0xf9   : > { %p4813_p1 = scmp.lt.s32.totalorder %s5346_s21, %s5993_s4  ;;  %p4814_p12 = scmp.lt.s32.totalorder %s4812_s28, %s4808_s27 }
  0xfa   : > { %p4810_p8 = pnand %p4809_p4, %p5108_p5 }
  0xfb   : > { %p4815_p7 = por %p4814_p12, %p4813_p1 }
  0xfc   : > { %p4811_p10 = pneg %p4810_p8 }
  0xfe   : > { %p4816_p11 = pnand %p4815_p7, %p4811_p10 }
 0x100   : > { %4819 = shalt.err (!%p4816_p11)
}
 0x101   : > { %s4820_s25 = scalar_lea.vmem %s799_s17, 256  ;;  %s4970_s19 = smov [#allocation9]  }
 0x102   : > { %p4821_p3 = scmp.ne.s32.totalorder %s799_s17, %s4820_s25  ;;  %s4824_s1 = sshll.u32 %s4970_s19, 4  ;;  %s4825_s1 = int_to_ptr.vmem [resolvable:$false] %s4824_s1 }
 0x103   : > { %s4826_s2 = scalar_lea.vmem %s4825_s1, 512  ;;  %p4827_p6 = scmp.lt.s32.totalorder %s799_s17, %s4825_s1 }
 0x104   : > { %p4822_p2 = pnand %p4821_p3, %p5108_p5  ;;  %p4828_p13 = scmp.lt.s32.totalorder %s4826_s2, %s4820_s25 }
 0x106   : > { %p4823_p0 = pneg %p4822_p2  ;;  %p4829_p4 = por %p4828_p13, %p4827_p6 }
 0x108   : > { %p4830_p8 = pnand %p4829_p4, %p4823_p0 }
 0x10a   : > { %4833 = shalt.err (!%p4830_p8)
}
 0x10b   : > { %s6064_s27 = smov 1   ;;  %s6065_s18 = smov 16  }
 0x10c   : > { %s6066_s16 = smov 32   ;;  %s5373_s30 = scalar_lea.hbm %s5994_s5, %s5229_s7 }
 0x10d   : > { %4354 = dma.hbm_to_vmem [thread:$0]  (%p5108_p5), %s5346_s21, 256, %s799_s17, %s5291_s6, %s6066_s16, %s6065_s18, %s6064_s27  }
 0x10e   : > { %s812_s2 = scalar_lea.vmem [#allocation10], %s5232_s26  ;;  %s6067_s19 = sand.u32 1, %s4952_s24  }
 0x10f   : > { %s818_s25 = sshll.u32 %s812_s2, 4  ;;  %s809_s1 = scalar_lea.sflag [#allocation11], %s6067_s19  ;;  %s5376_s25 = int_to_ptr.vmem [resolvable:$true] %s818_s25 }
 0x110   : > { %s4834_s3 = scalar_lea.hbm %s5373_s30, 128  ;;  %s4838_s17 = scalar_lea.hbm %s5994_s5, 256 }
 0x111   : > { %p4835_p10 = scmp.ne.s32.totalorder %s5373_s30, %s4834_s3  ;;  %p4839_p7 = scmp.lt.s32.totalorder %s5373_s30, %s5994_s5 }
 0x112   : > { %p4840_p11 = scmp.lt.s32.totalorder %s4838_s17, %s4834_s3 }
 0x113   : > { %p4836_p1 = pnand %p4835_p10, %p5108_p5 }
 0x114   : > { %p4841_p3 = por %p4840_p11, %p4839_p7 }
 0x115   : > { %p4837_p12 = pneg %p4836_p1 }
 0x117   : > { %p4842_p2 = pnand %p4841_p3, %p4837_p12 }
 0x119   : > { %4845 = shalt.err (!%p4842_p2)
}
 0x11a   : > { %s4846_s26 = scalar_lea.vmem %s5376_s25, 128  ;;  %s4971_s10 = smov [#allocation10]  }
 0x11b   : > { %p4847_p0 = scmp.ne.s32.totalorder %s5376_s25, %s4846_s26  ;;  %s4850_s2 = sshll.u32 %s4971_s10, 4  ;;  %s4851_s2 = int_to_ptr.vmem [resolvable:$false] %s4850_s2 }
 0x11c   : > { %s4852_s19 = scalar_lea.vmem %s4851_s2, 256  ;;  %p4853_p4 = scmp.lt.s32.totalorder %s5376_s25, %s4851_s2 }
 0x11d   : > { %p4848_p6 = pnand %p4847_p0, %p5108_p5  ;;  %p4854_p8 = scmp.lt.s32.totalorder %s4852_s19, %s4846_s26 }
 0x11f   : > { %p4849_p13 = pneg %p4848_p6  ;;  %p4855_p10 = por %p4854_p8, %p4853_p4 }
 0x121   : > { %p4856_p1 = pnand %p4855_p10, %p4849_p13 }
 0x123   : > { %4859 = shalt.err (!%p4856_p1)
}
 0x124   : > { %4355 = dma.hbm_to_vmem [thread:$0]  (%p5108_p5), %s5373_s30, 128, %s5376_s25, %s809_s1, %s6066_s16, %s6065_s18, %s6064_s27  }
 0x125 PF: > { %p6068_p12 = scmp.ne.s32.totalorder %s6050_s20, 0 }
 0x126   : > { %s6069_s3 = sld [smem:[#allocation39_spill]] (!%p6068_p12)  ;;  %s5406_s6 = sand.u32 (!%p6068_p12), 1, %s4944_s22  }
 0x127   : > { %830 = sbr.rel (%p6068_p12) target bundleno = 5559 (0x15b7), region = 158  ;;  %s5409_s21 = sshll.u32 (!%p6068_p12), %s5406_s6, 3 }
 0x128   : > { %s833_s0 = scalar_lea.sflag (!%p6068_p12), [#allocation3], %s5406_s6  ;;  %s5413_s17 = scalar_lea.vmem (!%p6068_p12), [#allocation2], %s5409_s21 }
 0x12c   : > { %p6070_p7 = scmp.ne.s32.totalorder %s6069_s3, 0 }
 0x12e   : > { %4903 = dma.done.wait (%p6070_p7), %s833_s0, 128  }
 0x12f   : > { %4905 = vsyncadd (%p6070_p7), %s833_s0, 4294967168  ;;  %s6071_s27 = sld [smem:[#allocation36_spill]]  ;;  %s3908_s18 = sshll.u32 %s5406_s6, 4 }
 0x130   : > { %s5422_s16 = scalar_lea.vmem [#allocation5], %s5409_s21  ;;  %s5424_s25 = scalar_lea.vmem [#allocation6], %s3908_s18 }
 0x135   : > { %s848_s20 = sand.u32 1, %s6071_s27  }
 0x136   : > { %s849_s30 = scalar_lea.sflag [#allocation7], %s848_s20 }
 0x137   : > { %4907 = dma.done.wait (%p6070_p7), %s849_s30, 512  }
 0x138   : > { %4909 = vsyncadd (%p6070_p7), %s849_s30, 4294966784  ;;  %s5430_s1 = scalar_lea.vmem [#allocation8], %s3908_s18  ;;  %s5432_s7 = scalar_lea.vmem [#allocation9], %s3908_s18 }
 0x139   : > { %s874_s28 = scalar_lea.sflag [#allocation11], %s848_s20  ;;  %s5435_s26 = scalar_lea.vmem [#allocation10], %s5409_s21 }
 0x13a   : > { %4911 = dma.done.wait (%p6070_p7), %s874_s28, 128  }
 0x13b   : > { %4913 = vsyncadd (%p6070_p7), %s874_s28, 4294967168  ;;  %p6072_p5 = scmp.eq.s32.totalorder %s6071_s27, 0 }
 0x13d   : > { %4915 = dma.done.wait (%p6072_p5), [#allocation11], 2048   ;;  %p6073_p11 = pmov %p6072_p5 }
 0x13e   : > { %p6074_p3 = pmov %p6072_p5 }
 0x13f   : > { %4917 = vsyncadd (%p6073_p11), [#allocation11], 4294965248 }
 0x140   : > { %4919 = dma.done.wait (%p6074_p3), [#allocation14], 4096   ;;  %p6075_p2 = pmov %p6074_p3 }
 0x142   : > { %4921 = vsyncadd (%p6075_p2), [#allocation14], 4294963200  ;;  %p6076_p0 = pmov %p6075_p2 }
 0x144   : > { %4923 = dma.done.wait (%p6076_p0), [#allocation17], 2064   ;;  %p6077_p6 = pmov %p6076_p0 }
 0x145   : > { %p6078_p13 = pmov %p6076_p0 }
 0x146   : > { %4925 = vsyncadd (%p6077_p6), [#allocation17], 4294965232 }
 0x147   : > { %4927 = dma.done.wait (%p6078_p13), [#allocation20], 32   ;;  %p6079_p4 = pmov %p6076_p0 }
 0x148   : > { %p6080_p8 = pmov %p6076_p0 }
 0x149   : > { %4929 = vsyncadd (%p6079_p4), [#allocation20], 4294967264 }
 0x14a   : > { %4931 = dma.done.wait (%p6080_p8), [#allocation23], 32   ;;  %p6081_p10 = pmov %p6076_p0 }
 0x14b   : > { %v4972_v24 = vmov 0.0   ;;  %vm4973_vm0 = vmmov 0   ;;  %v1239_v25 = vld [vmem:[#allocation13 + $0x78] sm:$0xff]  ;;  %v1238_v27 = vld [vmem:[#allocation13 + $0x70] sm:$0xff]  ;;  %v1237_v29 = vld [vmem:[#allocation13 + $0x68] sm:$0xff]  ;;  %v1111_v32 = vlaneseq  ;;  %s6082_s19 = sld [smem:[#allocation48_spill]] }
 0x14c   : > { %4933 = vsyncadd (%p6081_p10), [#allocation23], 4294967264  ;;  %4082 = vmatprep.subr.mxu0 %v4972_v24  ;;  %4114 = vmatprep.mubr.msk.f32.mxu0 %vm4973_vm0, %v4972_v24  ;;  %v1088_v26 = vld [vmem:[#allocation12 + $0x78] sm:$0xff]  ;;  %v1087_v28 = vld [vmem:[#allocation12 + $0x70] sm:$0xff]  ;;  %v4974_v30 = vmov 1966171168  }
 0x14d   : > { %4117 = vmatprep.subr.mxu1 %v1239_v25  ;;  %4083 = vmatpush3.xpose.msra.mxu0 %v1088_v26  ;;  %v1109_v31 = vunpack.c.l.s4 %v4974_v30  ;;  %v1086_v33 = vld [vmem:[#allocation12 + $0x68] sm:$0xff]  ;;  %v1236_v34 = vld [vmem:[#allocation13 + $0x60] sm:$0xff]  ;;  %v5466_v37 = vshrl.u32 %v1111_v32, 7  ;;  %v1235_v38 = vld [vmem:[#allocation13 + $0x58] sm:$0xff]  ;;  %vm1653_vm1 = vcmask 130048   ;;  %s4975_s3 = smov 112  }
 0x14e   : > { %4118 = vmatpush3.xpose.msra.mxu1 %v1239_v25  ;;  %4084 = vmatprep.subr.mxu0 %v4972_v24  ;;  %v1085_v35 = vld [vmem:[#allocation12 + $0x60] sm:$0xff]  ;;  %v1084_v44 = vld [vmem:[#allocation12 + $0x58] sm:$0xff]  ;;  %v1234_v63 = vld [vmem:[#allocation13 + $0x50] sm:$0xff]  ;;  %s4976_s0 = smov 96   ;;  %s4978_s20 = smov 64   ;;  %vm3052_vm2 = vcmask 261120  }
 0x14f   : > { %4119 = vmatprep.subr.mxu1 %v1238_v27  ;;  %v1110_v36 = vunpack.c.0.s8 %v1109_v31  ;;  %v1009_v39 = vld [vmem:[%s5424_s25] sm:$0x1]  ;;  %v1010_v40 = vld [vmem:[%s5424_s25 + $0x1] sm:$0x1]  ;;  %v1011_v41 = vld [vmem:[%s5424_s25 + $0x2] sm:$0x1] }
 0x150   : > { %v1012_v42 = vld [vmem:[%s5424_s25 + $0x3] sm:$0x1]  ;;  %v1013_v43 = vld [vmem:[%s5424_s25 + $0x4] sm:$0x1]  ;;  %v1014_v45 = vld [vmem:[%s5424_s25 + $0x5] sm:$0x1] }
 0x151   : > { %4085 = vmatpush3.xpose.msra.mxu0 %v1087_v28  ;;  %v1015_v46 = vld [vmem:[%s5424_s25 + $0x6] sm:$0x1]  ;;  %v1016_v47 = vld [vmem:[%s5424_s25 + $0x7] sm:$0x1]  ;;  %v1025_v48 = vld [vmem:[%s5430_s1] sm:$0x1]  ;;  %v5481_v51 = vsub.s32 %v1110_v36, %v5466_v37 }
 0x152   : > { %4120 = vmatpush3.xpose.msra.mxu1 %v1238_v27  ;;  %4086 = vmatprep.subr.mxu0 %v4972_v24  ;;  %v1026_v49 = vld [vmem:[%s5430_s1 + $0x1] sm:$0x1]  ;;  %v1027_v50 = vld [vmem:[%s5430_s1 + $0x2] sm:$0x1]  ;;  %v1028_v52 = vld [vmem:[%s5430_s1 + $0x3] sm:$0x1]  ;;  %v1041_v55 = vadd.f32 %v1025_v48, %v1009_v39 }
 0x153   : > { %4121 = vmatprep.subr.mxu1 %v1237_v29  ;;  %v1029_v53 = vld [vmem:[%s5430_s1 + $0x4] sm:$0x1]  ;;  %v1030_v54 = vld [vmem:[%s5430_s1 + $0x5] sm:$0x1]  ;;  %v1042_v56 = vadd.f32 %v1026_v49, %v1010_v40  ;;  %v1043_v57 = vadd.f32 %v1027_v50, %v1011_v41  ;;  %v1031_v58 = vld [vmem:[%s5430_s1 + $0x6] sm:$0x1]  ;;  %v1044_v60 = vadd.f32 %v1028_v52, %v1012_v42 }
 0x154   : > { %v1032_v59 = vld [vmem:[%s5430_s1 + $0x7] sm:$0x1]  ;;  %v1045_v61 = vadd.f32 %v1029_v53, %v1013_v43  ;;  %v1046_v62 = vadd.f32 %v1030_v54, %v1014_v45  ;;  %v1047_v0 = vadd.f32 %v1031_v58, %v1015_v46  ;;  %v1233_v10 = vld [vmem:[#allocation13 + $0x48] sm:$0xff]  ;;  %v1231_v20 = vld [vmem:[#allocation13 + $0x38] sm:$0xff]  ;;  %s4979_s18 = smov 48   ;;  %s4981_s30 = smov 16  }
 0x155   : > { %4087 = vmatpush3.xpose.msra.mxu0 %v1086_v33  ;;  %v1048_v1 = vadd.f32 %v1032_v59, %v1016_v47  ;;  %v1263_v2 = vcombine.low %v1041_v55, %v1042_v56  ;;  %v1264_v3 = vcombine.low %v1043_v57, %v1044_v60  ;;  %v1083_v5 = vld [vmem:[#allocation12 + $0x50] sm:$0xff]  ;;  %v1082_v13 = vld [vmem:[#allocation12 + $0x48] sm:$0xff]  ;;  %v1232_v16 = vld [vmem:[#allocation13 + $0x40] sm:$0xff]  ;;  %vm3054_vm3 = vcmask 392192   ;;  %s6083_s10 = sld [smem:[#allocation49_spill]] }
 0x156   : > { %4122 = vmatpush3.xpose.msra.mxu1 %v1237_v29  ;;  %4088 = vmatprep.subr.mxu0 %v4972_v24  ;;  %v1265_v4 = vcombine.low %v1045_v61, %v1046_v62  ;;  %v1081_v18 = vld [vmem:[#allocation12 + $0x40] sm:$0xff]  ;;  %v1080_v21 = vld [vmem:[#allocation12 + $0x38] sm:$0xff]  ;;  %v1230_v22 = vld [vmem:[#allocation13 + $0x30] sm:$0xff]  ;;  %vm3056_vm4 = vcmask 523264   ;;  %vm3058_vm5 = vcmask 654336   ;;  %vm3060_vm6 = vcmask 785408  }
 0x157   : > { %4123 = vmatprep.subr.mxu1 %v1236_v34  ;;  %v1266_v6 = vcombine.low %v1047_v0, %v1048_v1  ;;  %v1273_v7 = vrot.slane %v1263_v2, %v5481_v51  ;;  %v1280_v8 = vrot.slane %v1264_v3, %v5481_v51  ;;  %v1079_v23 = vld [vmem:[#allocation12 + $0x30] sm:$0xff]  ;;  %v1017_v25 = vld [vmem:[%s5424_s25 + $0x8] sm:$0x1]  ;;  %v1018_v27 = vld [vmem:[%s5424_s25 + $0x9] sm:$0x1]  ;;  %vm3062_vm7 = vcmask 916480  }
 0x158   : > { %v1287_v9 = vrot.slane %v1265_v4, %v5481_v51  ;;  %v1033_v26 = vld [vmem:[%s5430_s1 + $0x8] sm:$0x1]  ;;  %v1019_v28 = vld [vmem:[%s5424_s25 + $0xa] sm:$0x1]  ;;  %v1020_v29 = vld [vmem:[%s5424_s25 + $0xb] sm:$0x1] }
 0x159   : > { %4089 = vmatpush3.xpose.msra.mxu0 %v1085_v35  ;;  %v1294_v11 = vrot.slane %v1266_v6, %v5481_v51  ;;  %v1295_v12 = vcombine.low %v1273_v7, %v1280_v8  ;;  %v1034_v30 = vld [vmem:[%s5430_s1 + $0x9] sm:$0x1]  ;;  %v1035_v31 = vld [vmem:[%s5430_s1 + $0xa] sm:$0x1]  ;;  %v1036_v32 = vld [vmem:[%s5430_s1 + $0xb] sm:$0x1]  ;;  %v1049_v55 = vadd.f32 %v1033_v26, %v1017_v25 }
 0x15a   : > { %4124 = vmatpush3.xpose.msra.mxu1 %v1236_v34  ;;  %4090 = vmatprep.subr.mxu0 %v4972_v24  ;;  %v1229_v33 = vld [vmem:[#allocation13 + $0x28] sm:$0xff]  ;;  %v985_v34 = vld [vmem:[%s5413_s17] sm:$0x1]  ;;  %v986_v35 = vld [vmem:[%s5413_s17 + $0x1] sm:$0x1]  ;;  %v1050_v62 = vadd.f32 %v1034_v30, %v1018_v27  ;;  %v1052_v0 = vadd.f32 %v1036_v32, %v1020_v29 }
 0x15b   : > { %4125 = vmatprep.subr.mxu1 %v1235_v38  ;;  %v1296_v14 = vcombine.low %v1287_v9, %v1294_v11  ;;  %v1303_v15 = vrot.slane %v1295_v12, %v5481_v51  ;;  %v987_v36 = vld [vmem:[%s5413_s17 + $0x2] sm:$0x1]  ;;  %v989_v39 = vld [vmem:[%s5413_s17 + $0x4] sm:$0x1]  ;;  %v990_v40 = vld [vmem:[%s5413_s17 + $0x5] sm:$0x1] }
 0x15c   : > { %v991_v41 = vld [vmem:[%s5413_s17 + $0x6] sm:$0x1]  ;;  %v992_v42 = vld [vmem:[%s5413_s17 + $0x7] sm:$0x1]  ;;  %v993_v43 = vld [vmem:[%s5422_s16] sm:$0x1] }
 0x15d   : > { %4091 = vmatpush3.xpose.msra.mxu0 %v1084_v44  ;;  %v1310_v17 = vrot.slane %v1296_v14, %v5481_v51  ;;  %v994_v44 = vld [vmem:[%s5422_s16 + $0x1] sm:$0x1]  ;;  %v1021_v46 = vld [vmem:[%s5424_s25 + $0xc] sm:$0x1]  ;;  %v1022_v47 = vld [vmem:[%s5424_s25 + $0xd] sm:$0x1]  ;;  %v1001_v1 = vadd.f32 %v993_v43, %v985_v34 }
 0x15e   : > { %4126 = vmatpush3.xpose.msra.mxu1 %v1235_v38  ;;  %4092 = vmatprep.subr.mxu0 %v4972_v24  ;;  %v988_v38 = vld [vmem:[%s5413_s17 + $0x3] sm:$0x1]  ;;  %v1078_v45 = vld [vmem:[#allocation12 + $0x28] sm:$0xff]  ;;  %v1002_v2 = vadd.f32 %v994_v44, %v986_v35  ;;  %v1077_v14 = vld [vmem:[#allocation12 + $0x20] sm:$0xff]  ;;  %s4977_s17 = smov 80  }
 0x15f   : > { %4127 = vmatprep.subr.mxu1 %v1234_v63  ;;  %v1311_v19 = vcombine.low %v1303_v15, %v1310_v17  ;;  %v1023_v48 = vld [vmem:[%s5424_s25 + $0xe] sm:$0x1]  ;;  %v1024_v49 = vld [vmem:[%s5424_s25 + $0xf] sm:$0x1]  ;;  %v1037_v50 = vld [vmem:[%s5430_s1 + $0xc] sm:$0x1] }
 0x160   : > { %v995_v52 = vld [vmem:[%s5422_s16 + $0x2] sm:$0x1]  ;;  %v996_v53 = vld [vmem:[%s5422_s16 + $0x3] sm:$0x1]  ;;  %v997_v54 = vld [vmem:[%s5422_s16 + $0x4] sm:$0x1] }
 0x161   : > { %4093 = vmatpush3.xpose.msra.mxu0 %v1083_v5  ;;  %4149 = vmatprep.mubr.f32.mxu1 %v1311_v19  ;;  %v998_v56 = vld [vmem:[%s5422_s16 + $0x5] sm:$0x1]  ;;  %v999_v57 = vld [vmem:[%s5422_s16 + $0x6] sm:$0x1]  ;;  %v1000_v58 = vld [vmem:[%s5422_s16 + $0x7] sm:$0x1]  ;;  %v1003_v3 = vadd.f32 %v995_v52, %v987_v36  ;;  %v1004_v4 = vadd.f32 %v996_v53, %v988_v38  ;;  %v1005_v6 = vadd.f32 %v997_v54, %v989_v39 }
 0x162   : > { %4128 = vmatpush3.xpose.msra.mxu1 %v1234_v63  ;;  %4094 = vmatprep.subr.mxu0 %v4972_v24  ;;  %v1038_v59 = vld [vmem:[%s5430_s1 + $0xd] sm:$0x1]  ;;  %v1039_v60 = vld [vmem:[%s5430_s1 + $0xe] sm:$0x1]  ;;  %v1040_v61 = vld [vmem:[%s5430_s1 + $0xf] sm:$0x1]  ;;  %v1051_v63 = vadd.f32 %v1035_v31, %v1019_v28  ;;  %v1006_v7 = vadd.f32 %v998_v56, %v990_v40  ;;  %v1007_v8 = vadd.f32 %v999_v57, %v991_v41 }
 0x163   : > { %4129 = vmatprep.subr.mxu1 %v1233_v10  ;;  %v1228_v5 = vld [vmem:[#allocation13 + $0x20] sm:$0xff]  ;;  %v1008_v9 = vadd.f32 %v1000_v58, %v992_v42  ;;  %v1054_v11 = vadd.f32 %v1038_v59, %v1022_v47  ;;  %v1055_v12 = vadd.f32 %v1039_v60, %v1023_v48  ;;  %v1227_v15 = vld [vmem:[#allocation13 + $0x18] sm:$0xff]  ;;  %v1105_v17 = vcombine.low %v1003_v3, %v1004_v4  ;;  %v1226_v26 = vld [vmem:[#allocation13 + $0x10] sm:$0xff]  ;;  %s4980_s16 = smov 32   ;;  %s3961_s25 = sshll.u32 %s6071_s27, 4 }
 0x164   : > { %v1076_v25 = vld [vmem:[#allocation12 + $0x18] sm:$0xff]  ;;  %v1075_v35 = vld [vmem:[#allocation12 + $0x10] sm:$0xff]  ;;  %v1225_v36 = vld [vmem:[#allocation13 + $0x8] sm:$0xff]  ;;  %s984_s1 = scalar_lea.vmem [#allocation25], %s5409_s21  ;;  %s5942_s2 = scalar_lea.hbm %s6083_s10, %s3961_s25 }
 0x165   : > { %4095 = vmatpush3.xpose.msra.mxu0 %v1082_v13  ;;  %v1056_v13 = vadd.f32 %v1040_v61, %v1024_v49  ;;  %v1107_v19 = vcombine.low %v1007_v8, %v1008_v9  ;;  %v1121_v28 = vrot.slane %v1105_v17, %v5481_v51  ;;  %v1074_v42 = vld [vmem:[#allocation12 + $0x8] sm:$0xff]  ;;  %v1224_v43 = vld [vmem:[#allocation13] sm:$0xff]  ;;  %v3922_v53 = vld [vmem:[%s6082_s19] ss:$0 sm:$0xff]  ;;  %s6084_s27 = sld [smem:[#allocation40_spill]]  ;;  %s3613_s21 = scalar_lea.sflag [#allocation4], %s5406_s6 }
 0x166   : > { %4130 = vmatpush3.xpose.msra.mxu1 %v1233_v10  ;;  %4096 = vmatprep.subr.mxu0 %v4972_v24  ;;  %v1053_v10 = vadd.f32 %v1037_v50, %v1021_v46  ;;  %v1073_v48 = vld [vmem:[#allocation12] sm:$0xff] }
 0x167   : > { %4131 = vmatprep.subr.mxu1 %v1232_v16  ;;  %v1135_v30 = vrot.slane %v1107_v19, %v5481_v51  ;;  %v3923_v52 = vld [vmem:[#allocation18] ss:$0 sm:$0xff]  ;;  %v1059_v3 = vld [vmem:[%s5432_s7 + $0x2] sm:$0x1]  ;;  %v1060_v4 = vld [vmem:[%s5432_s7 + $0x3] sm:$0x1] }
 0x168   : > { %v1063_v8 = vld [vmem:[%s5432_s7 + $0x6] sm:$0x1]  ;;  %v1064_v9 = vld [vmem:[%s5432_s7 + $0x7] sm:$0x1]  ;;  %v1449_v19 = vld [vmem:[#allocation15 + $0x58] sm:$0xff] }
 0x169   : > { %4097 = vmatpush3.xpose.msra.mxu0 %v1081_v18  ;;  %v1106_v18 = vcombine.low %v1005_v6, %v1006_v7  ;;  %v1062_v7 = vld [vmem:[%s5432_s7 + $0x5] sm:$0x1] }
 0x16a   : > { %4132 = vmatpush3.xpose.msra.mxu1 %v1232_v16  ;;  %4098 = vmatprep.subr.mxu0 %v4972_v24  ;;  %v1104_v16 = vcombine.low %v1001_v1, %v1002_v2  ;;  %v1057_v1 = vld [vmem:[%s5432_s7] sm:$0x1]  ;;  %v1058_v2 = vld [vmem:[%s5432_s7 + $0x1] sm:$0x1] }
 0x16b   : > { %4133 = vmatprep.subr.mxu1 %v1231_v20  ;;  %v1128_v29 = vrot.slane %v1106_v18, %v5481_v51  ;;  %v1477_v6 = vcombine.low %v1057_v1, %v1058_v2  ;;  %p6085_p12 = scmp.ne.s32.totalorder %s6084_s27, 0 }
 0x16c   : > { %v1114_v27 = vrot.slane %v1104_v16, %v5481_v51 }
 0x16d   : > { %4099 = vmatpush3.xpose.msra.mxu0 %v1080_v21  ;;  %v1313_v21 = vcombine.low %v1051_v63, %v1052_v0  ;;  %v1137_v39 = vcombine.low %v1128_v29, %v1135_v30  ;;  %v1452_v63 = vld [vmem:[#allocation15 + $0x70] sm:$0xff]  ;;  %v1451_v0 = vld [vmem:[#allocation15 + $0x68] sm:$0xff] }
 0x16e   : > { %4134 = vmatpush3.xpose.msra.mxu1 %v1231_v20  ;;  %4100 = vmatprep.subr.mxu0 %v4972_v24  ;;  %v1312_v20 = vcombine.low %v1049_v55, %v1050_v62  ;;  %v1136_v38 = vcombine.low %v1114_v27, %v1121_v28  ;;  %v1453_v62 = vld [vmem:[#allocation15 + $0x78] sm:$0xff]  ;;  %v1446_v27 = vld [vmem:[#allocation15 + $0x40] sm:$0xff]  ;;  %v1444_v29 = vld [vmem:[#allocation15 + $0x30] sm:$0xff] }
 0x16f   : > { %4135 = vmatprep.subr.mxu1 %v1230_v22  ;;  %v1329_v32 = vrot.slane %v1313_v21, %v5481_v51  ;;  %v1445_v28 = vld [vmem:[#allocation15 + $0x38] sm:$0xff]  ;;  %v1443_v30 = vld [vmem:[#allocation15 + $0x28] sm:$0xff] }
 0x170   : > { %v1322_v31 = vrot.slane %v1312_v20, %v5481_v51  ;;  %v1144_v44 = vrot.slane %v1136_v38, %v5481_v51  ;;  %v1070_v38 = vld [vmem:[%s5432_s7 + $0xd] sm:$0x1] }
 0x171   : > { %4101 = vmatpush3.xpose.msra.mxu0 %v1079_v23  ;;  %v1315_v23 = vcombine.low %v1055_v12, %v1056_v13  ;;  %v1480_v13 = vcombine.low %v1063_v8, %v1064_v9 }
 0x172   : > { %4136 = vmatpush3.xpose.msra.mxu1 %v1230_v22  ;;  %4102 = vmatprep.subr.mxu0 %v4972_v24  ;;  %v1314_v22 = vcombine.low %v1053_v10, %v1054_v11  ;;  %v1344_v40 = vcombine.low %v1322_v31, %v1329_v32  ;;  %v1478_v10 = vcombine.low %v1059_v3, %v1060_v4  ;;  %v1450_v11 = vld [vmem:[#allocation15 + $0x60] sm:$0xff]  ;;  %v1065_v32 = vld [vmem:[%s5432_s7 + $0x8] sm:$0x1] }
 0x173   : > { %4137 = vmatprep.subr.mxu1 %v1229_v33  ;;  %v1343_v34 = vrot.slane %v1315_v23, %v5481_v51  ;;  %v1508_v17 = vrot.slane %v1480_v13, %v5481_v51  ;;  %v1448_v23 = vld [vmem:[#allocation15 + $0x50] sm:$0xff]  ;;  %v1442_v31 = vld [vmem:[#allocation15 + $0x20] sm:$0xff] }
 0x174   : > { %v1352_v46 = vrot.slane %v1344_v40, %v5481_v51  ;;  %v1072_v40 = vld [vmem:[%s5432_s7 + $0xf] sm:$0x1] }
 0x175   : > { %4103 = vmatpush3.xpose.msra.mxu0 %v1078_v45  ;;  %v1151_v45 = vrot.slane %v1137_v39, %v5481_v51  ;;  %v1071_v39 = vld [vmem:[%s5432_s7 + $0xe] sm:$0x1] }
 0x176   : > { %4138 = vmatpush3.xpose.msra.mxu1 %v1229_v33  ;;  %4104 = vmatprep.subr.mxu0 %v4972_v24  ;;  %v1336_v33 = vrot.slane %v1314_v22, %v5481_v51 }
 0x177   : > { %4139 = vmatprep.subr.mxu1 %v1228_v5  ;;  %v1152_v49 = vcombine.low %v1144_v44, %v1151_v45  ;;  %v1529_v45 = vcombine.low %v1071_v39, %v1072_v40 }
 0x178   : > { %v1345_v41 = vcombine.low %v1336_v33, %v1343_v34  ;;  %v1066_v33 = vld [vmem:[%s5432_s7 + $0x9] sm:$0x1]  ;;  %v1067_v34 = vld [vmem:[%s5432_s7 + $0xa] sm:$0x1] }
 0x179   : > { %4105 = vmatpush3.xpose.msra.mxu0 %v1077_v14  ;;  %v1487_v14 = vrot.slane %v1477_v6, %v5481_v51 }
 0x17a   : > { %4140 = vmatpush3.xpose.msra.mxu1 %v1228_v5  ;;  %4106 = vmatprep.subr.mxu0 %v4972_v24  ;;  %v1359_v47 = vrot.slane %v1345_v41, %v5481_v51  ;;  %v1061_v5 = vld [vmem:[%s5432_s7 + $0x4] sm:$0x1]  ;;  %v1441_v41 = vld [vmem:[#allocation15 + $0x18] sm:$0xff] }
 0x17b   : > { %4141 = vmatprep.subr.mxu1 %v1227_v15  ;;  %v1479_v12 = vcombine.low %v1061_v5, %v1062_v7  ;;  %v3924_v7 = vld [vmem:[#allocation19] ss:$0 sm:$0xff] }
 0x17c   : > { %v1360_v50 = vcombine.low %v1352_v46, %v1359_v47  ;;  %v1440_v46 = vld [vmem:[#allocation15 + $0x10] sm:$0xff] }
 0x17d   : > { %4107 = vmatpush3.xpose.msra.mxu0 %v1076_v25  ;;  %v1501_v16 = vrot.slane %v1479_v12, %v5481_v51 }
 0x17e   : > { %4142 = vmatpush3.xpose.msra.mxu1 %v1227_v15  ;;  %4108 = vmatprep.subr.mxu0 %v4972_v24  ;;  %v1494_v15 = vrot.slane %v1478_v10, %v5481_v51 }
 0x17f   : > { %4143 = vmatprep.subr.mxu1 %v1226_v26  ;;  %v1510_v20 = vcombine.low %v1501_v16, %v1508_v17 }
 0x180   : > { %v1509_v18 = vcombine.low %v1487_v14, %v1494_v15 }
 0x181   : > { %4109 = vmatpush3.xpose.msra.mxu0 %v1075_v35  ;;  %v1524_v22 = vrot.slane %v1510_v20, %v5481_v51  ;;  %v1068_v35 = vld [vmem:[%s5432_s7 + $0xb] sm:$0x1] }
 0x182   : > { %4144 = vmatpush3.xpose.msra.mxu1 %v1226_v26  ;;  %4110 = vmatprep.subr.mxu0 %v4972_v24  ;;  %v1517_v21 = vrot.slane %v1509_v18, %v5481_v51  ;;  %v1447_v26 = vld [vmem:[#allocation15 + $0x48] sm:$0xff] }
 0x183   : > { %4145 = vmatprep.subr.mxu1 %v1225_v36 }
 0x184   : > { %v1525_v25 = vcombine.low %v1517_v21, %v1524_v22 }
 0x185   : > { %4111 = vmatpush3.xpose.msra.mxu0 %v1074_v42  ;;  %v1526_v42 = vcombine.low %v1065_v32, %v1066_v33 }
 0x186   : > { %4146 = vmatpush3.xpose.msra.mxu1 %v1225_v36  ;;  %4112 = vmatprep.subr.mxu0 %v4972_v24  ;;  %v1069_v36 = vld [vmem:[%s5432_s7 + $0xc] sm:$0x1]  ;;  %s3625_s7 = sshll.u32 %s984_s1, 4  ;;  %s5944_s7 = int_to_ptr.vmem [resolvable:$true] %s3625_s7 }
 0x187   : > { %4147 = vmatprep.subr.mxu1 %v1224_v43  ;;  %v1528_v44 = vcombine.low %v1069_v36, %v1070_v38  ;;  %v1536_v47 = vrot.slane %v1526_v42, %v5481_v51  ;;  %s4860_s19 = scalar_lea.vmem %s5944_s7, 128 }
 0x188   : > { %p4861_p1 = scmp.ne.s32.totalorder %s5944_s7, %s4860_s19 }
 0x189   : > { %4113 = vmatpush3.xpose.msra.mxu0 %v1073_v48 }
 0x18a   : > { %4148 = vmatpush3.xpose.msra.mxu1 %v1224_v43  ;;  %4152 = vmatprep.subr.mxu0 %v1453_v62  ;;  %v1527_v43 = vcombine.low %v1067_v34, %v1068_v35  ;;  %p4862_p7 = pnand %p4861_p1, %p6085_p12 }
 0x18b   : > { %4187 = vmatprep.subr.mxu1 %v4972_v24 }
 0x18c   : > { %4115 = vmatmul.mubr.f32.vlgmr.msra.gmra.mxu0 %v1152_v49  ;;  %v1543_v48 = vrot.slane %v1527_v43, %v5481_v51  ;;  %v1550_v49 = vrot.slane %v1528_v44, %v5481_v51  ;;  %p4863_p5 = pneg %p4862_p7 }
 0x18d   : > { %4150 = vmatmul.mubr.f32.vlgmr.msra.gmra.mxu1 %v1360_v50  ;;  %4153 = vmatpush3.xpose.msra.mxu0 %v1453_v62  ;;  %v1557_v50 = vrot.slane %v1529_v45, %v5481_v51 }
 0x18e   : > { %4191 = vmatprep.mubr.msk.f32.mxu1 %vm4973_vm0, %v4972_v24  ;;  %4154 = vmatprep.subr.mxu0 %v1452_v63 }
 0x18f   : > { %4184 = vmatprep.mubr.f32.mxu0 %v1525_v25 }
 0x191   : > { %4155 = vmatpush3.xpose.msra.mxu0 %v1452_v63 }
 0x192   : > { %4156 = vmatprep.subr.mxu0 %v1451_v0 }
 0x195   : > { %4157 = vmatpush3.xpose.msra.mxu0 %v1451_v0 }
 0x196   : > { %4158 = vmatprep.subr.mxu0 %v1450_v11 }
 0x199   : > { %4159 = vmatpush3.xpose.msra.mxu0 %v1450_v11 }
 0x19a   : > { %4160 = vmatprep.subr.mxu0 %v1449_v19 }
 0x19d   : > { %4161 = vmatpush3.xpose.msra.mxu0 %v1449_v19 }
 0x19e   : > { %4162 = vmatprep.subr.mxu0 %v1448_v23 }
 0x1a1   : > { %4163 = vmatpush3.xpose.msra.mxu0 %v1448_v23 }
 0x1a2   : > { %4164 = vmatprep.subr.mxu0 %v1447_v26 }
 0x1a5   : > { %4165 = vmatpush3.xpose.msra.mxu0 %v1447_v26 }
 0x1a6   : > { %4166 = vmatprep.subr.mxu0 %v1446_v27 }
 0x1a9   : > { %4167 = vmatpush3.xpose.msra.mxu0 %v1446_v27 }
 0x1aa   : > { %4168 = vmatprep.subr.mxu0 %v1445_v28 }
 0x1ad   : > { %4169 = vmatpush3.xpose.msra.mxu0 %v1445_v28 }
 0x1ae   : > { %4170 = vmatprep.subr.mxu0 %v1444_v29 }
 0x1b1   : > { %4171 = vmatpush3.xpose.msra.mxu0 %v1444_v29 }
 0x1b2   : > { %4172 = vmatprep.subr.mxu0 %v1443_v30 }
 0x1b5   : > { %4173 = vmatpush3.xpose.msra.mxu0 %v1443_v30 }
 0x1b6   : > { %4174 = vmatprep.subr.mxu0 %v1442_v31 }
 0x1b9   : > { %4175 = vmatpush3.xpose.msra.mxu0 %v1442_v31 }
 0x1ba   : > { %4176 = vmatprep.subr.mxu0 %v1441_v41 }
 0x1bd   : > { %4177 = vmatpush3.xpose.msra.mxu0 %v1441_v41 }
 0x1be   : > { %4178 = vmatprep.subr.mxu0 %v1440_v46 }
 0x1c1   : > { %4179 = vmatpush3.xpose.msra.mxu0 %v1440_v46 }
 0x24c   : > { %v1220_v54 = vpop.f32.mrf.mxu0 }
 0x24d   : > { %v4151_v55 = vpop.f32.mrf.mxu1  ;;  %v1221_v59 = vadd.f32 %v3922_v53, %v1220_v54  ;;  %v1558_v53 = vcombine.low %v1536_v47, %v1543_v48  ;;  %v1559_v54 = vcombine.low %v1550_v49, %v1557_v50 }
 0x24e   : > { %v5556_v56 = vadd.f32 %v4151_v55, %v3923_v52  ;;  %v4116_v57 = vpop.f32.mrf.mxu0  ;;  %v1438_v55 = vld [vmem:[#allocation15] sm:$0xff] }
 0x24f   : > { %v1429_v58 = vpop.f32.mrf.mxu1  ;;  %v5565_v61 = vmul.f32 0.25, %v1221_v59  ;;  %v1566_v57 = vrot.slane %v1558_v53, %v5481_v51 }
 0x250   : > { %1821 = vrot.lane.b32.xlu1 %v5556_v56, %s4975_s3  ;;  %4188 = vmatpush3.xpose.msk.msra.mxu1 %vm1653_vm1, %v5556_v56  ;;  %v5563_v60 = vadd.f32 %v3923_v52, %v1429_v58  ;;  %v1439_v52 = vld [vmem:[#allocation15 + $0x8] sm:$0xff]  ;;  %v1573_v58 = vrot.slane %v1559_v54, %v5481_v51 }
 0x251   : > { %4189 = vmatprep.subr.mxu1 %v4972_v24  ;;  %4180 = vmatprep.subr.mxu0 %v1439_v52 }
 0x252   : > { %4181 = vmatpush3.xpose.msra.mxu0 %v1439_v52  ;;  %v1574_v59 = vcombine.low %v1566_v57, %v1573_v58 }
 0x253   : > { %4182 = vmatprep.subr.mxu0 %v1438_v55 }
 0x254   : > { %1819 = vrot.lane.b32.xlu1 %v5563_v60, %s4975_s3  ;;  %4190 = vmatpush3.xpose.msk.msra.mxu1 %vm1653_vm1, %v5563_v60 }
 0x255   : > { %4194 = vmatprep.subr.mxu1 %v4972_v24 }
 0x256   : > { %4183 = vmatpush3.xpose.msra.mxu0 %v1438_v55 }
 0x257   : > { %4192 = vmatmul.mubr.msk.f32.vlgmr.msra.gmra.mxu1 %vm1653_vm1, %v5565_v61  ;;  %4299 = vmatprep.subr.mxu0 %v4972_v24 }
 0x258   : > { %4198 = vmatprep.mubr.msk.f32.mxu1 %vm4973_vm0, %v4972_v24 }
 0x259   : > { %4185 = vmatmul.mubr.f32.vlgmr.msra.gmra.mxu0 %v1574_v59 }
 0x25a   : > { %4331 = vmatprep.mubr.msk.f32.mxu0 %vm4973_vm0, %v4972_v24 }
 0x2c2   : > { %v1822_v13 = vpop.permute.xlu1 %1821 }
 0x2c6   : > { %v1820_v15 = vpop.permute.xlu1 %1819 }
 0x317   : > { %v1729_v62 = vpop.f32.mrf.mxu1 }
 0x318   : > { %v1733_v63 = vsel %vm1653_vm1, %v1729_v62, -inf }
 0x319   : > { %1734 = vmax.xlane.f32.xlu0 %v1733_v63  ;;  %v4193_v0 = vpop.f32.mrf.mxu1  ;;  %v4186_v6 = vpop.f32.mrf.mxu0 }
 0x31a   : > { %v5609_v8 = vadd.f32 %v4186_v6, %v3924_v7 }
 0x31b   : > { %v1643_v9 = vpop.f32.mrf.mxu0 }
 0x31c   : > { %v5611_v10 = vadd.f32 %v3924_v7, %v1643_v9  ;;  %4195 = vmatpush3.msra.mxu1 %v5609_v8 }
 0x31d   : > { %4196 = vmatprep.subr.mxu1 %v4972_v24 }
 0x31e   : > { %4197 = vmatpush3.msra.mxu1 %v5611_v10 }
 0x31f   : > { %4201 = vmatprep.subr.mxu1 %v4972_v24 }
 0x3a2   : > { %v1735_v1 = vpop.xlane.xlu0 %1734 }
 0x3a3   : > { %v1736_v2 = vsub.f32 %v1729_v62, %v1735_v1 }
 0x3a5   : > { %v1737_v3 = vmul.f32 1.442695, %v1736_v2 }
 0x3a7   : > { %4488 = vpow2.f32 %v1737_v3 }
 0x3b4   : > { %v4489_v4 = vpop.eup %4488 }
 0x3b5   : > { %v1739_v5 = vsel %vm1653_vm1, %v4489_v4, 0.0 }
 0x3b6   : > { %1740 = vadd.xlane.f32.xlu0 %v1739_v5 }
 0x3cc   : > { %1817 = vrot.lane.b32.xlu0 %v5565_v61, %s4975_s3 }
 0x43f   : > { %v1741_v11 = vpop.xlane.xlu0 %1740 }
 0x440   : > { %4490 = vrcp.f32 %v1741_v11 }
 0x443   : > { %v1818_v16 = vpop.permute.xlu0 %1817 }
 0x44d   : > { %v4491_v12 = vpop.eup %4490 }
 0x44e   : > { %v1743_v14 = vmul.f32 %v4491_v12, %v4489_v4 }
 0x450   : > { %4199 = vmatmul.mubr.msk.f32.vlgmr.msra.gmra.mxu1 %vm1653_vm1, %v1743_v14 }
 0x451   : > { %4202 = vmatpush3.xpose.msk.msra.mxu1 %vm1653_vm1, %v1822_v13  ;;  %4205 = vmatprep.mubr.msk.f32.mxu1 %vm4973_vm0, %v4972_v24 }
 0x452   : > { %4203 = vmatprep.subr.mxu1 %v4972_v24 }
 0x455   : > { %4204 = vmatpush3.xpose.msk.msra.mxu1 %vm1653_vm1, %v1820_v15 }
 0x456   : > { %4208 = vmatprep.subr.mxu1 %v4972_v24 }
 0x458   : > { %4206 = vmatmul.mubr.msk.f32.vlgmr.msra.gmra.mxu1 %vm1653_vm1, %v1818_v16 }
 0x459   : > { %4212 = vmatprep.mubr.msk.f32.mxu1 %vm4973_vm0, %v4972_v24 }
 0x510   : > { %v5629_v17 = vpop.f32.mrf.mxu1 }
 0x512   : > { %v4200_v18 = vpop.f32.mrf.mxu1 }
 0x518   : > { %v1895_v19 = vpop.f32.mrf.mxu1 }
 0x519   : > { %v1899_v20 = vsel %vm1653_vm1, %v1895_v19, -inf }
 0x51a   : > { %1900 = vmax.xlane.f32.xlu1 %v1899_v20  ;;  %v4207_v21 = vpop.f32.mrf.mxu1 }
 0x52b   : > { %1914 = vrot.lane.b32.xlu1 %v5609_v8, %s4975_s3 }
 0x52f   : > { %1995 = vrot.lane.b32.xlu1 %v5556_v56, %s4976_s0 }
 0x533   : > { %1993 = vrot.lane.b32.xlu1 %v5563_v60, %s4976_s0 }
 0x537   : > { %1991 = vrot.lane.b32.xlu1 %v5565_v61, %s4976_s0 }
 0x5a3   : > { %v1901_v22 = vpop.xlane.xlu1 %1900 }
 0x5a4   : > { %v1902_v23 = vsub.f32 %v1895_v19, %v1901_v22 }
 0x5a6   : > { %v1903_v25 = vmul.f32 1.442695, %v1902_v23 }
 0x5a7   : > { %v1915_v26 = vpop.permute.xlu1 %1914 }
 0x5a8   : > { %4492 = vpow2.f32 %v1903_v25  ;;  %4209 = vmatpush3.msra.mxu1 %v1915_v26 }
 0x5a9   : > { %4210 = vmatprep.subr.mxu1 %v4972_v24 }
 0x5ab   : > { %v1996_v31 = vpop.permute.xlu1 %1995 }
 0x5af   : > { %v1994_v34 = vpop.permute.xlu1 %1993 }
 0x5b3   : > { %v1992_v35 = vpop.permute.xlu1 %1991 }
 0x5b5   : > { %v4493_v27 = vpop.eup %4492 }
 0x5b6   : > { %v1905_v28 = vsel %vm1653_vm1, %v4493_v27, 0.0 }
 0x5b7   : > { %1906 = vadd.xlane.f32.xlu0 %v1905_v28 }
 0x5cd   : > { %1912 = vrot.lane.b32.xlu0 %v5611_v10, %s4975_s3 }
 0x640   : > { %v1907_v29 = vpop.xlane.xlu0 %1906 }
 0x641   : > { %4494 = vrcp.f32 %v1907_v29 }
 0x644   : > { %v1913_v30 = vpop.permute.xlu0 %1912 }
 0x645   : > { %4211 = vmatpush3.msra.mxu1 %v1913_v30 }
 0x646   : > { %4215 = vmatprep.subr.mxu1 %v4972_v24 }
 0x64e   : > { %v4495_v32 = vpop.eup %4494 }
 0x64f   : > { %v1909_v33 = vmul.f32 %v4495_v32, %v4493_v27 }
 0x651   : > { %4213 = vmatmul.mubr.msk.f32.vlgmr.msra.gmra.mxu1 %vm1653_vm1, %v1909_v33 }
 0x652   : > { %4216 = vmatpush3.xpose.msk.msra.mxu1 %vm1653_vm1, %v1996_v31  ;;  %4219 = vmatprep.mubr.msk.f32.mxu1 %vm4973_vm0, %v4972_v24 }
 0x653   : > { %4217 = vmatprep.subr.mxu1 %v4972_v24 }
 0x656   : > { %4218 = vmatpush3.xpose.msk.msra.mxu1 %vm1653_vm1, %v1994_v34 }
 0x657   : > { %4222 = vmatprep.subr.mxu1 %v4972_v24 }
 0x659   : > { %4220 = vmatmul.mubr.msk.f32.vlgmr.msra.gmra.mxu1 %vm1653_vm1, %v1992_v35 }
 0x65a   : > { %4226 = vmatprep.mubr.msk.f32.mxu1 %vm4973_vm0, %v4972_v24 }
 0x711   : > { %v5655_v36 = vpop.f32.mrf.mxu1 }
 0x713   : > { %v4214_v38 = vpop.f32.mrf.mxu1 }
 0x719   : > { %v2069_v39 = vpop.f32.mrf.mxu1 }
 0x71a   : > { %v2073_v40 = vsel %vm1653_vm1, %v2069_v39, -inf }
 0x71b   : > { %2074 = vmax.xlane.f32.xlu1 %v2073_v40  ;;  %v4221_v41 = vpop.f32.mrf.mxu1 }
 0x72c   : > { %2086 = vrot.lane.b32.xlu1 %v5609_v8, %s4976_s0 }
 0x730   : > { %2167 = vrot.lane.b32.xlu1 %v5556_v56, %s4977_s17 }
 0x734   : > { %2165 = vrot.lane.b32.xlu1 %v5563_v60, %s4977_s17 }
 0x738   : > { %2163 = vrot.lane.b32.xlu1 %v5565_v61, %s4977_s17 }
 0x73c   : > { %2256 = vrot.lane.b32.xlu1 %v5611_v10, %s4977_s17 }
 0x7a4   : > { %v2075_v42 = vpop.xlane.xlu1 %2074 }
 0x7a5   : > { %v2076_v43 = vsub.f32 %v2069_v39, %v2075_v42 }
 0x7a7   : > { %v2077_v44 = vmul.f32 1.442695, %v2076_v43 }
 0x7a8   : > { %v2087_v45 = vpop.permute.xlu1 %2086 }
 0x7a9   : > { %4496 = vpow2.f32 %v2077_v44  ;;  %4223 = vmatpush3.msra.mxu1 %v2087_v45 }
 0x7aa   : > { %4224 = vmatprep.subr.mxu1 %v4972_v24 }
 0x7ac   : > { %v2168_v50 = vpop.permute.xlu1 %2167 }
 0x7b0   : > { %v2166_v54 = vpop.permute.xlu1 %2165 }
 0x7b4   : > { %v2164_v55 = vpop.permute.xlu1 %2163 }
 0x7b6   : > { %v4497_v46 = vpop.eup %4496 }
 0x7b7   : > { %v2079_v47 = vsel %vm1653_vm1, %v4497_v46, 0.0 }
 0x7b8   : > { %2080 = vadd.xlane.f32.xlu0 %v2079_v47  ;;  %v2257_v4 = vpop.permute.xlu1 %2256 }
 0x7ce   : > { %2084 = vrot.lane.b32.xlu0 %v5611_v10, %s4976_s0 }
 0x841   : > { %v2081_v48 = vpop.xlane.xlu0 %2080 }
 0x842   : > { %4498 = vrcp.f32 %v2081_v48 }
 0x845   : > { %v2085_v49 = vpop.permute.xlu0 %2084 }
 0x846   : > { %4225 = vmatpush3.msra.mxu1 %v2085_v49 }
 0x847   : > { %4229 = vmatprep.subr.mxu1 %v4972_v24 }
 0x84f   : > { %v4499_v52 = vpop.eup %4498 }
 0x850   : > { %v2083_v53 = vmul.f32 %v4499_v52, %v4497_v46 }
 0x852   : > { %4227 = vmatmul.mubr.msk.f32.vlgmr.msra.gmra.mxu1 %vm1653_vm1, %v2083_v53 }
 0x853   : > { %4230 = vmatpush3.xpose.msk.msra.mxu1 %vm1653_vm1, %v2168_v50  ;;  %4233 = vmatprep.mubr.msk.f32.mxu1 %vm4973_vm0, %v4972_v24 }
 0x854   : > { %4231 = vmatprep.subr.mxu1 %v4972_v24 }
 0x857   : > { %4232 = vmatpush3.xpose.msk.msra.mxu1 %vm1653_vm1, %v2166_v54 }
 0x858   : > { %4236 = vmatprep.subr.mxu1 %v4972_v24 }
 0x85a   : > { %4234 = vmatmul.mubr.msk.f32.vlgmr.msra.gmra.mxu1 %vm1653_vm1, %v2164_v55 }
 0x85b   : > { %4240 = vmatprep.mubr.msk.f32.mxu1 %vm4973_vm0, %v4972_v24 }
 0x912   : > { %v5683_v57 = vpop.f32.mrf.mxu1 }
 0x914   : > { %v4228_v58 = vpop.f32.mrf.mxu1 }
 0x91a   : > { %v2241_v59 = vpop.f32.mrf.mxu1 }
 0x91b   : > { %v2245_v62 = vsel %vm1653_vm1, %v2241_v59, -inf }
 0x91c   : > { %2246 = vmax.xlane.f32.xlu0 %v2245_v62  ;;  %v4235_v63 = vpop.f32.mrf.mxu1 }
 0x932   : > { %2258 = vrot.lane.b32.xlu0 %v5609_v8, %s4977_s17 }
 0x936   : > { %2339 = vrot.lane.b32.xlu0 %v5556_v56, %s4978_s20 }
 0x93a   : > { %2335 = vrot.lane.b32.xlu0 %v5565_v61, %s4978_s20 }
 0x9a5   : > { %v2247_v0 = vpop.xlane.xlu0 %2246 }
 0x9a6   : > { %v2248_v1 = vsub.f32 %v2241_v59, %v2247_v0 }
 0x9a8   : > { %v2249_v2 = vmul.f32 1.442695, %v2248_v1 }
 0x9a9   : > { %v2259_v3 = vpop.permute.xlu0 %2258 }
 0x9aa   : > { %4500 = vpow2.f32 %v2249_v2  ;;  %4237 = vmatpush3.msra.mxu1 %v2259_v3 }
 0x9ab   : > { %4238 = vmatprep.subr.mxu1 %v4972_v24 }
 0x9ac   : > { %4239 = vmatpush3.msra.mxu1 %v2257_v4 }
 0x9ad   : > { %4243 = vmatprep.subr.mxu1 %v4972_v24  ;;  %v2340_v12 = vpop.permute.xlu0 %2339 }
 0x9b1   : > { %v2336_v14 = vpop.permute.xlu0 %2335 }
 0x9b7   : > { %v4501_v5 = vpop.eup %4500 }
 0x9b8   : > { %v2251_v6 = vsel %vm1653_vm1, %v4501_v5, 0.0 }
 0x9b9   : > { %2252 = vadd.xlane.f32.xlu1 %v2251_v6 }
 0x9ca   : > { %2337 = vrot.lane.b32.xlu1 %v5563_v60, %s4978_s20 }
 0xa42   : > { %v2253_v7 = vpop.xlane.xlu1 %2252 }
 0xa43   : > { %4502 = vrcp.f32 %v2253_v7 }
 0xa46   : > { %v2338_v13 = vpop.permute.xlu1 %2337 }
 0xa50   : > { %v4503_v9 = vpop.eup %4502 }
 0xa51   : > { %v2255_v11 = vmul.f32 %v4503_v9, %v4501_v5 }
 0xa53   : > { %4241 = vmatmul.mubr.msk.f32.vlgmr.msra.gmra.mxu1 %vm1653_vm1, %v2255_v11 }
 0xa54   : > { %4244 = vmatpush3.xpose.msk.msra.mxu1 %vm1653_vm1, %v2340_v12  ;;  %4247 = vmatprep.mubr.msk.f32.mxu1 %vm4973_vm0, %v4972_v24 }
 0xa55   : > { %4245 = vmatprep.subr.mxu1 %v4972_v24 }
 0xa58   : > { %4246 = vmatpush3.xpose.msk.msra.mxu1 %vm1653_vm1, %v2338_v13 }
 0xa59   : > { %4250 = vmatprep.subr.mxu1 %v4972_v24 }
 0xa5b   : > { %4248 = vmatmul.mubr.msk.f32.vlgmr.msra.gmra.mxu1 %vm1653_vm1, %v2336_v14 }
 0xa5c   : > { %4254 = vmatprep.mubr.msk.f32.mxu1 %vm4973_vm0, %v4972_v24 }
 0xb13   : > { %v5707_v15 = vpop.f32.mrf.mxu1 }
 0xb15   : > { %v4242_v16 = vpop.f32.mrf.mxu1 }
 0xb1b   : > { %v2413_v18 = vpop.f32.mrf.mxu1 }
 0xb1c   : > { %v2417_v19 = vsel %vm1653_vm1, %v2413_v18, -inf }
 0xb1d   : > { %2418 = vmax.xlane.f32.xlu1 %v2417_v19  ;;  %v4249_v20 = vpop.f32.mrf.mxu1 }
 0xb2e   : > { %2428 = vrot.lane.b32.xlu1 %v5611_v10, %s4978_s20 }
 0xb32   : > { %2511 = vrot.lane.b32.xlu1 %v5556_v56, %s4979_s18 }
 0xb36   : > { %2507 = vrot.lane.b32.xlu1 %v5565_v61, %s4979_s18 }
 0xb3a   : > { %2600 = vrot.lane.b32.xlu1 %v5611_v10, %s4979_s18 }
 0xba6   : > { %v2419_v21 = vpop.xlane.xlu1 %2418 }
 0xba7   : > { %v2420_v22 = vsub.f32 %v2413_v18, %v2419_v21 }
 0xba9   : > { %v2421_v23 = vmul.f32 1.442695, %v2420_v22 }
 0xbaa   : > { %v2429_v29 = vpop.permute.xlu1 %2428 }
 0xbab   : > { %4504 = vpow2.f32 %v2421_v23 }
 0xbae   : > { %v2512_v32 = vpop.permute.xlu1 %2511 }
 0xbb2   : > { %v2508_v34 = vpop.permute.xlu1 %2507 }
 0xbb6   : > { %v2601_v46 = vpop.permute.xlu1 %2600 }
 0xbb8   : > { %v4505_v25 = vpop.eup %4504 }
 0xbb9   : > { %v2423_v26 = vsel %vm1653_vm1, %v4505_v25, 0.0 }
 0xbba   : > { %2424 = vadd.xlane.f32.xlu0 %v2423_v26 }
 0xbd0   : > { %2430 = vrot.lane.b32.xlu0 %v5609_v8, %s4978_s20 }
 0xbd4   : > { %2509 = vrot.lane.b32.xlu0 %v5563_v60, %s4979_s18 }
 0xc43   : > { %v2425_v27 = vpop.xlane.xlu0 %2424 }
 0xc44   : > { %4506 = vrcp.f32 %v2425_v27 }
 0xc47   : > { %v2431_v28 = vpop.permute.xlu0 %2430 }
 0xc48   : > { %4251 = vmatpush3.msra.mxu1 %v2431_v28  ;;  %v3079_v28 = vld [vmem:[#allocation16 + $0x78] sm:$0xff] }
 0xc49   : > { %4252 = vmatprep.subr.mxu1 %v4972_v24  ;;  %4300 = vmatpush3.xpose.msra.mxu0 %v3079_v28 }
 0xc4a   : > { %4253 = vmatpush3.msra.mxu1 %v2429_v29  ;;  %4301 = vmatprep.subr.mxu0 %v4972_v24  ;;  %v3076_v29 = vld [vmem:[#allocation16 + $0x60] sm:$0xff] }
 0xc4b   : > { %4257 = vmatprep.subr.mxu1 %v4972_v24  ;;  %v2510_v33 = vpop.permute.xlu0 %2509 }
 0xc51   : > { %v4507_v30 = vpop.eup %4506 }
 0xc52   : > { %v2427_v31 = vmul.f32 %v4507_v30, %v4505_v25  ;;  %v3075_v30 = vld [vmem:[#allocation16 + $0x58] sm:$0xff] }
 0xc54   : > { %4255 = vmatmul.mubr.msk.f32.vlgmr.msra.gmra.mxu1 %vm1653_vm1, %v2427_v31  ;;  %v3074_v31 = vld [vmem:[#allocation16 + $0x50] sm:$0xff] }
 0xc55   : > { %4258 = vmatpush3.xpose.msk.msra.mxu1 %vm1653_vm1, %v2512_v32  ;;  %4261 = vmatprep.mubr.msk.f32.mxu1 %vm4973_vm0, %v4972_v24  ;;  %v3073_v32 = vld [vmem:[#allocation16 + $0x48] sm:$0xff] }
 0xc56   : > { %4259 = vmatprep.subr.mxu1 %v4972_v24 }
 0xc59   : > { %4260 = vmatpush3.xpose.msk.msra.mxu1 %vm1653_vm1, %v2510_v33  ;;  %v3072_v33 = vld [vmem:[#allocation16 + $0x40] sm:$0xff] }
 0xc5a   : > { %4264 = vmatprep.subr.mxu1 %v4972_v24 }
 0xc5c   : > { %4262 = vmatmul.mubr.msk.f32.vlgmr.msra.gmra.mxu1 %vm1653_vm1, %v2508_v34  ;;  %v3071_v34 = vld [vmem:[#allocation16 + $0x38] sm:$0xff] }
 0xc5d   : > { %4268 = vmatprep.mubr.msk.f32.mxu1 %vm4973_vm0, %v4972_v24 }
 0xd14   : > { %v5735_v35 = vpop.f32.mrf.mxu1 }
 0xd16   : > { %v4256_v38 = vpop.f32.mrf.mxu1 }
 0xd17   : > { %v3069_v38 = vld [vmem:[#allocation16 + $0x28] sm:$0xff] }
 0xd1c   : > { %v2585_v39 = vpop.f32.mrf.mxu1 }
 0xd1d   : > { %v2589_v40 = vsel %vm1653_vm1, %v2585_v39, -inf }
 0xd1e   : > { %2590 = vmax.xlane.f32.xlu0 %v2589_v40  ;;  %v4263_v41 = vpop.f32.mrf.mxu1  ;;  %v3067_v40 = vld [vmem:[#allocation16 + $0x18] sm:$0xff] }
 0xd1f   : > { %v3066_v41 = vld [vmem:[#allocation16 + $0x10] sm:$0xff] }
 0xd34   : > { %2602 = vrot.lane.b32.xlu0 %v5609_v8, %s4979_s18 }
 0xd38   : > { %2683 = vrot.lane.b32.xlu0 %v5556_v56, %s4980_s16 }
 0xd3c   : > { %2679 = vrot.lane.b32.xlu0 %v5565_v61, %s4980_s16 }
 0xda7   : > { %v2591_v42 = vpop.xlane.xlu0 %2590 }
 0xda8   : > { %v2592_v43 = vsub.f32 %v2585_v39, %v2591_v42  ;;  %v3068_v39 = vld [vmem:[#allocation16 + $0x20] sm:$0xff]  ;;  %v3065_v42 = vld [vmem:[#allocation16 + $0x8] sm:$0xff] }
 0xdaa   : > { %v2593_v44 = vmul.f32 1.442695, %v2592_v43  ;;  %v3064_v43 = vld [vmem:[#allocation16] sm:$0xff] }
 0xdab   : > { %v2603_v45 = vpop.permute.xlu0 %2602 }
 0xdac   : > { %4508 = vpow2.f32 %v2593_v44  ;;  %4265 = vmatpush3.msra.mxu1 %v2603_v45 }
 0xdad   : > { %4266 = vmatprep.subr.mxu1 %v4972_v24 }
 0xdae   : > { %4267 = vmatpush3.msra.mxu1 %v2601_v46 }
 0xdaf   : > { %4271 = vmatprep.subr.mxu1 %v4972_v24  ;;  %v2684_v53 = vpop.permute.xlu0 %2683 }
 0xdb3   : > { %v2680_v55 = vpop.permute.xlu0 %2679 }
 0xdb9   : > { %v4509_v47 = vpop.eup %4508 }
 0xdba   : > { %v2595_v48 = vsel %vm1653_vm1, %v4509_v47, 0.0 }
 0xdbb   : > { %2596 = vadd.xlane.f32.xlu1 %v2595_v48 }
 0xdcc   : > { %2681 = vrot.lane.b32.xlu1 %v5563_v60, %s4980_s16 }
 0xe44   : > { %v2597_v49 = vpop.xlane.xlu1 %2596 }
 0xe45   : > { %4510 = vrcp.f32 %v2597_v49 }
 0xe48   : > { %v2682_v54 = vpop.permute.xlu1 %2681 }
 0xe52   : > { %v4511_v50 = vpop.eup %4510 }
 0xe53   : > { %v2599_v52 = vmul.f32 %v4511_v50, %v4509_v47 }
 0xe55   : > { %4269 = vmatmul.mubr.msk.f32.vlgmr.msra.gmra.mxu1 %vm1653_vm1, %v2599_v52 }
 0xe56   : > { %4272 = vmatpush3.xpose.msk.msra.mxu1 %vm1653_vm1, %v2684_v53  ;;  %4275 = vmatprep.mubr.msk.f32.mxu1 %vm4973_vm0, %v4972_v24 }
 0xe57   : > { %4273 = vmatprep.subr.mxu1 %v4972_v24 }
 0xe5a   : > { %4274 = vmatpush3.xpose.msk.msra.mxu1 %vm1653_vm1, %v2682_v54 }
 0xe5b   : > { %4278 = vmatprep.subr.mxu1 %v4972_v24 }
 0xe5d   : > { %4276 = vmatmul.mubr.msk.f32.vlgmr.msra.gmra.mxu1 %vm1653_vm1, %v2680_v55 }
 0xe5e   : > { %4282 = vmatprep.mubr.msk.f32.mxu1 %vm4973_vm0, %v4972_v24 }
 0xf15   : > { %v2675_v58 = vpop.f32.mrf.mxu1 }
 0xf17   : > { %v4270_v59 = vpop.f32.mrf.mxu1 }
 0xf1d   : > { %v2757_v62 = vpop.f32.mrf.mxu1 }
 0xf1e   : > { %v2761_v63 = vsel %vm1653_vm1, %v2757_v62, -inf }
 0xf1f   : > { %2762 = vmax.xlane.f32.xlu1 %v2761_v63  ;;  %v4277_v0 = vpop.f32.mrf.mxu1 }
 0xf30   : > { %2772 = vrot.lane.b32.xlu1 %v5611_v10, %s4980_s16 }
 0xf34   : > { %2855 = vrot.lane.b32.xlu1 %v5556_v56, %s4981_s30 }
 0xf38   : > { %2851 = vrot.lane.b32.xlu1 %v5565_v61, %s4981_s30 }
 0xfa8   : > { %v2763_v1 = vpop.xlane.xlu1 %2762 }
 0xfa9   : > { %v2764_v2 = vsub.f32 %v2757_v62, %v2763_v1 }
 0xfab   : > { %v2765_v3 = vmul.f32 1.442695, %v2764_v2 }
 0xfac   : > { %v2773_v7 = vpop.permute.xlu1 %2772 }
 0xfad   : > { %4512 = vpow2.f32 %v2765_v3 }
 0xfb0   : > { %v2856_v11 = vpop.permute.xlu1 %2855 }
 0xfb4   : > { %v2852_v12 = vpop.permute.xlu1 %2851 }
 0xfba   : > { %v4513_v4 = vpop.eup %4512 }
 0xfbb   : > { %v2767_v5 = vsel %vm1653_vm1, %v4513_v4, 0.0 }
 0xfbc   : > { %2768 = vadd.xlane.f32.xlu0 %v2767_v5 }
 0xfd2   : > { %2774 = vrot.lane.b32.xlu0 %v5609_v8, %s4980_s16 }
 0xfd6   : > { %2853 = vrot.lane.b32.xlu0 %v5563_v60, %s4981_s30 }
0x1045   : > { %v2769_v6 = vpop.xlane.xlu0 %2768 }
0x1046   : > { %4514 = vrcp.f32 %v2769_v6 }
0x1049   : > { %v2775_v56 = vpop.permute.xlu0 %2774 }
0x104a   : > { %4279 = vmatpush3.msra.mxu1 %v2775_v56 }
0x104b   : > { %4280 = vmatprep.subr.mxu1 %v4972_v24 }
0x104c   : > { %4281 = vmatpush3.msra.mxu1 %v2773_v7  ;;  %v3158_v7 = vld [vmem:[%s5435_s26 + $0x1] sm:$0x1] }
0x104d   : > { %4285 = vmatprep.subr.mxu1 %v4972_v24  ;;  %v2854_v60 = vpop.permute.xlu0 %2853 }
0x1053   : > { %v4515_v61 = vpop.eup %4514 }
0x1054   : > { %v2771_v9 = vmul.f32 %v4515_v61, %v4513_v4  ;;  %v3157_v61 = vld [vmem:[%s5435_s26] sm:$0x1] }
0x1056   : > { %4283 = vmatmul.mubr.msk.f32.vlgmr.msra.gmra.mxu1 %vm1653_vm1, %v2771_v9  ;;  %v3159_v9 = vld [vmem:[%s5435_s26 + $0x2] sm:$0x1] }
0x1057   : > { %4286 = vmatpush3.xpose.msk.msra.mxu1 %vm1653_vm1, %v2856_v11  ;;  %4289 = vmatprep.mubr.msk.f32.mxu1 %vm4973_vm0, %v4972_v24 }
0x1058   : > { %4287 = vmatprep.subr.mxu1 %v4972_v24 }
0x105b   : > { %4288 = vmatpush3.xpose.msk.msra.mxu1 %vm1653_vm1, %v2854_v60 }
0x105c   : > { %4292 = vmatprep.subr.mxu1 %v4972_v24 }
0x105e   : > { %4290 = vmatmul.mubr.msk.f32.vlgmr.msra.gmra.mxu1 %vm1653_vm1, %v2852_v12 }
0x105f   : > { %4296 = vmatprep.mubr.msk.f32.mxu1 %vm4973_vm0, %v4972_v24 }
0x1116   : > { %v2847_v13 = vpop.f32.mrf.mxu1 }
0x1118   : > { %v4284_v14 = vpop.f32.mrf.mxu1 }
0x1119   : > { %v3160_v14 = vld [vmem:[%s5435_s26 + $0x3] sm:$0x1] }
0x111e   : > { %v2929_v16 = vpop.f32.mrf.mxu1 }
0x111f   : > { %v2933_v18 = vsel %vm1653_vm1, %v2929_v16, -inf }
0x1120   : > { %2934 = vmax.xlane.f32.xlu0 %v2933_v18  ;;  %v4291_v19 = vpop.f32.mrf.mxu1  ;;  %v3162_v18 = vld [vmem:[%s5435_s26 + $0x5] sm:$0x1] }
0x1136   : > { %2946 = vrot.lane.b32.xlu0 %v5609_v8, %s4981_s30 }
0x113a   : > { %3024 = vrot.lane.b32.xlu0 %v5655_v36, %s4981_s30 }
0x113e   : > { %3032 = vrot.lane.b32.xlu0 %v5707_v15, %s4979_s18 }
0x1142   : > { %3040 = vrot.lane.b32.xlu0 %v2675_v58, %s4977_s17 }
0x11a9   : > { %v2935_v20 = vpop.xlane.xlu0 %2934 }
0x11aa   : > { %v2936_v21 = vsub.f32 %v2929_v16, %v2935_v20  ;;  %v3161_v16 = vld [vmem:[%s5435_s26 + $0x4] sm:$0x1] }
0x11ac   : > { %v2937_v22 = vmul.f32 1.442695, %v2936_v21 }
0x11ad   : > { %v2947_v23 = vpop.permute.xlu0 %2946 }
0x11ae   : > { %4516 = vpow2.f32 %v2937_v22  ;;  %4293 = vmatpush3.msra.mxu1 %v2947_v23  ;;  %v3163_v23 = vld [vmem:[%s5435_s26 + $0x6] sm:$0x1] }
0x11af   : > { %4294 = vmatprep.subr.mxu1 %v4972_v24 }
0x11b1   : > { %v3025_v46 = vpop.permute.xlu0 %3024 }
0x11b2   : > { %v3051_v49 = vsel %vm1653_vm1, %v5629_v17, %v3025_v46  ;;  %v3957_v17 = vld [vmem:[#allocation21] ss:$0 sm:$0xff]  ;;  %v3304_v46 = vsub.s32 2, %v5466_v37 }
0x11b5   : > { %v3033_v48 = vpop.permute.xlu0 %3032 }
0x11b9   : > { %v3041_v54 = vpop.permute.xlu0 %3040 }
0x11bb   : > { %v4517_v25 = vpop.eup %4516 }
0x11bc   : > { %v2939_v26 = vsel %vm1653_vm1, %v4517_v25, 0.0 }
0x11bd   : > { %2940 = vadd.xlane.f32.xlu1 %v2939_v26 }
0x11ce   : > { %2944 = vrot.lane.b32.xlu1 %v5611_v10, %s4981_s30  ;;  %v3078_v10 = vld [vmem:[#allocation16 + $0x70] sm:$0xff] }
0x11cf   : > { %4302 = vmatpush3.xpose.msra.mxu0 %v3078_v10 }
0x11d0   : > { %4303 = vmatprep.subr.mxu0 %v4972_v24 }
0x11d2   : > { %3028 = vrot.lane.b32.xlu1 %v5683_v57, %s4980_s16  ;;  %v3077_v57 = vld [vmem:[#allocation16 + $0x68] sm:$0xff] }
0x11d3   : > { %4304 = vmatpush3.xpose.msra.mxu0 %v3077_v57 }
0x11d4   : > { %4305 = vmatprep.subr.mxu0 %v4972_v24 }
0x11d6   : > { %3036 = vrot.lane.b32.xlu1 %v5735_v35, %s4978_s20  ;;  %v3070_v35 = vld [vmem:[#allocation16 + $0x30] sm:$0xff] }
0x11d7   : > { %4306 = vmatpush3.xpose.msra.mxu0 %v3076_v29 }
0x11d8   : > { %4307 = vmatprep.subr.mxu0 %v4972_v24 }
0x11da   : > { %3044 = vrot.lane.b32.xlu1 %v2847_v13, %s4976_s0 }
0x11db   : > { %4308 = vmatpush3.xpose.msra.mxu0 %v3075_v30 }
0x11dc   : > { %4309 = vmatprep.subr.mxu0 %v4972_v24 }
0x11df   : > { %4310 = vmatpush3.xpose.msra.mxu0 %v3074_v31 }
0x11e0   : > { %4311 = vmatprep.subr.mxu0 %v4972_v24 }
0x11e3   : > { %4312 = vmatpush3.xpose.msra.mxu0 %v3073_v32 }
0x11e4   : > { %4313 = vmatprep.subr.mxu0 %v4972_v24 }
0x11e7   : > { %4314 = vmatpush3.xpose.msra.mxu0 %v3072_v33 }
0x11e8   : > { %4315 = vmatprep.subr.mxu0 %v4972_v24 }
0x11eb   : > { %4316 = vmatpush3.xpose.msra.mxu0 %v3071_v34 }
0x11ec   : > { %4317 = vmatprep.subr.mxu0 %v4972_v24 }
0x11ef   : > { %4318 = vmatpush3.xpose.msra.mxu0 %v3070_v35 }
0x11f0   : > { %4319 = vmatprep.subr.mxu0 %v4972_v24 }
0x11f3   : > { %4320 = vmatpush3.xpose.msra.mxu0 %v3069_v38 }
0x11f4   : > { %4321 = vmatprep.subr.mxu0 %v4972_v24 }
0x11f7   : > { %4322 = vmatpush3.xpose.msra.mxu0 %v3068_v39 }
0x11f8   : > { %4323 = vmatprep.subr.mxu0 %v4972_v24 }
0x11fb   : > { %4324 = vmatpush3.xpose.msra.mxu0 %v3067_v40 }
0x11fc   : > { %4325 = vmatprep.subr.mxu0 %v4972_v24 }
0x11ff   : > { %4326 = vmatpush3.xpose.msra.mxu0 %v3066_v41 }
0x1200   : > { %4327 = vmatprep.subr.mxu0 %v4972_v24 }
0x1203   : > { %4328 = vmatpush3.xpose.msra.mxu0 %v3065_v42 }
0x1204   : > { %4329 = vmatprep.subr.mxu0 %v4972_v24 }
0x1207   : > { %4330 = vmatpush3.xpose.msra.mxu0 %v3064_v43 }
0x1246   : > { %v2941_v8 = vpop.xlane.xlu1 %2940 }
0x1247   : > { %4518 = vrcp.f32 %v2941_v8  ;;  %v3164_v8 = vld [vmem:[%s5435_s26 + $0x7] sm:$0x1] }
0x124a   : > { %v2945_v36 = vpop.permute.xlu1 %2944 }
0x124b   : > { %4295 = vmatpush3.msra.mxu1 %v2945_v36 }
0x124e   : > { %v3029_v47 = vpop.permute.xlu1 %3028 }
0x124f   : > { %v3053_v52 = vsel %vm3052_vm2, %v3051_v49, %v3029_v47  ;;  %v3308_v47 = vsub.s32 3, %v5466_v37  ;;  %v3312_v49 = vsub.s32 4, %v5466_v37 }
0x1250   : > { %v3055_v53 = vsel %vm3054_vm3, %v3053_v52, %v3033_v48  ;;  %v3320_v52 = vsub.s32 6, %v5466_v37 }
0x1252   : > { %v3037_v50 = vpop.permute.xlu1 %3036 }
0x1253   : > { %v3057_v24 = vsel %vm3056_vm4, %v3055_v53, %v3037_v50  ;;  %v3316_v50 = vsub.s32 5, %v5466_v37  ;;  %v3324_v53 = vsub.s32 7, %v5466_v37 }
0x1254   : > { %v4519_v15 = vpop.eup %4518  ;;  %v3059_v58 = vsel %vm3058_vm5, %v3057_v24, %v3041_v54 }
0x1255   : > { %v2943_v27 = vmul.f32 %v4519_v15, %v4517_v25 }
0x1256   : > { %v3045_v55 = vpop.permute.xlu1 %3044 }
0x1257   : > { %4297 = vmatmul.mubr.msk.f32.vlgmr.msra.gmra.mxu1 %vm1653_vm1, %v2943_v27  ;;  %v3061_v59 = vsel %vm3060_vm6, %v3059_v58, %v3045_v55 }
0x1317   : > { %v3019_v44 = vpop.f32.mrf.mxu1 }
0x1318   : > { %3048 = vrot.lane.b32.xlu0 %v3019_v44, %s4975_s3  ;;  %v3296_v44 = vsub.s32 0, %v5466_v37  ;;  %s4982_s3 = smov [#allocation25]  }
0x1319   : > { %v4298_v45 = vpop.f32.mrf.mxu1  ;;  %s4864_s0 = sshll.u32 %s4982_s3, 4  ;;  %s4865_s0 = int_to_ptr.vmem [resolvable:$false] %s4864_s0 }
0x131a   : > { %v3300_v45 = vsub.s32 1, %v5466_v37  ;;  %s4866_s17 = scalar_lea.vmem %s4865_s0, 256  ;;  %p4867_p11 = scmp.lt.s32.totalorder %s5944_s7, %s4865_s0 }
0x131b   : > { %p4868_p3 = scmp.lt.s32.totalorder %s4866_s17, %s4860_s19 }
0x131d   : > { %p4869_p2 = por %p4868_p3, %p4867_p11 }
0x131f   : > { %p4870_p0 = pnand %p4869_p2, %p4863_p5 }
0x138a   : > { %v3049_v62 = vpop.permute.xlu0 %3048 }
0x138b   : > { %v3063_v63 = vsel %vm3062_vm7, %v3061_v59, %v3049_v62 }
0x138c   : > { %4332 = vmatmul.mubr.f32.vlgmr.msra.gmra.mxu0 %v3063_v63 }
0x144c   : > { %v3153_v0 = vpop.f32.mrf.mxu0 }
0x144d   : > { %v3154_v1 = vadd.f32 %v3957_v17, %v3153_v0 }
0x144e   : > { %v4333_v2 = vpop.f32.mrf.mxu0 }
0x144f   : > { %v3166_v3 = vcombine.high %v3154_v1, %v3154_v1  ;;  %v3173_v4 = vrot.slane %v3154_v1, %v5481_v51 }
0x1451   : > { %v3180_v5 = vrot.slane %v3166_v3, %v5481_v51  ;;  %v3181_v6 = vcombine.high %v3173_v4, %v3173_v4  ;;  %v3189_v56 = vrot.slane %v3173_v4, %v5481_v51 }
0x1453   : > { %v3182_v11 = vcombine.high %v3180_v5, %v3180_v5  ;;  %v3196_v60 = vrot.slane %v3180_v5, %v5481_v51  ;;  %v3203_v12 = vrot.slane %v3181_v6, %v5481_v51  ;;  %v3211_v13 = vcombine.high %v3189_v56, %v3189_v56 }
0x1454   : > { %v3223_v25 = vadd.f32 %v3189_v56, %v3157_v61 }
0x1455   : > { %v3210_v19 = vrot.slane %v3182_v11, %v5481_v51  ;;  %v3212_v20 = vcombine.high %v3196_v60, %v3196_v60  ;;  %v3213_v21 = vcombine.high %v3203_v12, %v3203_v12  ;;  %v3224_v22 = vadd.f32 %v3203_v12, %v3158_v7 }
0x1456   : > { %v3225_v26 = vadd.f32 %v3211_v13, %v3159_v9  ;;  %v3227_v27 = vadd.f32 %v3196_v60, %v3161_v16 }
0x1457   : > { %v3214_v36 = vcombine.high %v3210_v19, %v3210_v19  ;;  %v3226_v15 = vadd.f32 %v3213_v21, %v3160_v14  ;;  %v3228_v28 = vadd.f32 %v3210_v19, %v3162_v18  ;;  %v3239_v10 = vcombine.low %v3223_v25, %v3224_v22 }
0x1458   : > { %v3229_v57 = vadd.f32 %v3212_v20, %v3163_v23 }
0x1459   : > { %v3230_v29 = vadd.f32 %v3214_v36, %v3164_v8  ;;  %v3240_v30 = vcombine.low %v3225_v26, %v3226_v15  ;;  %v3241_v31 = vcombine.low %v3227_v27, %v3228_v28  ;;  %v3249_v33 = vrot.slane %v3239_v10, %v5481_v51  ;;  %v3958_v10 = vld [vmem:[#allocation22] ss:$0 sm:$0xff] }
0x145b   : > { %v3242_v32 = vcombine.low %v3229_v57, %v3230_v29  ;;  %v3256_v34 = vrot.slane %v3240_v30, %v5481_v51  ;;  %v3263_v35 = vrot.slane %v3241_v31, %v5481_v51  ;;  %v3468_v31 = vcombine.high %v3958_v10, %v3958_v10 }
0x145d   : > { %v3270_v38 = vrot.slane %v3242_v32, %v5481_v51  ;;  %v3271_v39 = vcombine.low %v3249_v33, %v3256_v34  ;;  %v3475_v34 = vrot.slane %v3958_v10, %v5481_v51 }
0x145f   : > { %v3272_v40 = vcombine.low %v3263_v35, %v3270_v38  ;;  %v3279_v41 = vrot.slane %v3271_v39, %v5481_v51  ;;  %v3482_v35 = vrot.slane %v3468_v31, %v5481_v51 }
0x1461   : > { %v3286_v42 = vrot.slane %v3272_v40, %v5481_v51  ;;  %v3483_v40 = vcombine.high %v3475_v34, %v3475_v34 }
0x1463   : > { %v3287_v43 = vcombine.low %v3279_v41, %v3286_v42  ;;  %v3484_v41 = vcombine.high %v3482_v35, %v3482_v35 }
0x1465   : > { %3289 = vadd.xlane.f32.xlu1 %v3287_v43 }
0x14ee   : > { %v3290_v48 = vpop.xlane.xlu1 %3289 }
0x14ef   : > { %v3292_v54 = vmul.f32 0.0078125, %v3290_v48  ;;  %v3491_v48 = vrot.slane %v3475_v34, %v5481_v51 }
0x14f1   : > { %v3297_v24 = vrot.slane %v3292_v54, %v3296_v44  ;;  %v3301_v55 = vrot.slane %v3292_v54, %v3300_v45  ;;  %v3305_v58 = vrot.slane %v3292_v54, %v3304_v46  ;;  %v3309_v59 = vrot.slane %v3292_v54, %v3308_v47 }
0x14f2   : > { %v3313_v62 = vrot.slane %v3292_v54, %v3312_v49  ;;  %v3317_v63 = vrot.slane %v3292_v54, %v3316_v50  ;;  %v3321_v17 = vrot.slane %v3292_v54, %v3320_v52  ;;  %v3325_v0 = vrot.slane %v3292_v54, %v3324_v53 }
0x14f3   : > { %v5863_v1 = vsub.f32 %v3223_v25, %v3297_v24  ;;  %v5865_v2 = vsub.f32 %v3224_v22, %v3301_v55  ;;  %v5867_v3 = vsub.f32 %v3225_v26, %v3305_v58  ;;  %v5869_v4 = vsub.f32 %v3226_v15, %v3309_v59 }
0x14f4   : > { %v5871_v5 = vsub.f32 %v3227_v27, %v3313_v62  ;;  %v5873_v6 = vsub.f32 %v3228_v28, %v3317_v63  ;;  %v5875_v56 = vsub.f32 %v3229_v57, %v3321_v17  ;;  %v5877_v7 = vsub.f32 %v3230_v29, %v3325_v0  ;;  %v3959_v57 = vld [vmem:[#allocation24] ss:$0 sm:$0xff] }
0x14f5   : > { %v3342_v61 = vmul.f32 %v5863_v1, %v5863_v1  ;;  %v3343_v9 = vmul.f32 %v5865_v2, %v5865_v2  ;;  %v3344_v11 = vmul.f32 %v5867_v3, %v5867_v3  ;;  %v3345_v60 = vmul.f32 %v5869_v4, %v5869_v4 }
0x14f6   : > { %v3346_v12 = vmul.f32 %v5871_v5, %v5871_v5  ;;  %v3347_v13 = vmul.f32 %v5873_v6, %v5873_v6  ;;  %v3348_v14 = vmul.f32 %v5875_v56, %v5875_v56  ;;  %v3349_v16 = vmul.f32 %v5877_v7, %v5877_v7 }
0x14f7   : > { %v3358_v18 = vcombine.low %v3342_v61, %v3343_v9  ;;  %v3359_v19 = vcombine.low %v3344_v11, %v3345_v60  ;;  %v3539_v32 = vcombine.high %v3959_v57, %v3959_v57  ;;  %v3546_v38 = vrot.slane %v3959_v57, %v5481_v51 }
0x14f8   : > { %v3360_v20 = vcombine.low %v3346_v12, %v3347_v13  ;;  %v3361_v21 = vcombine.low %v3348_v14, %v3349_v16  ;;  %v3498_v54 = vrot.slane %v3482_v35, %v5481_v51  ;;  %v3505_v24 = vrot.slane %v3483_v40, %v5481_v51 }
0x14f9   : > { %v3368_v22 = vrot.slane %v3358_v18, %v5481_v51  ;;  %v3375_v23 = vrot.slane %v3359_v19, %v5481_v51  ;;  %v3553_v39 = vrot.slane %v3539_v32, %v5481_v51  ;;  %v3554_v42 = vcombine.high %v3546_v38, %v3546_v38 }
0x14fa   : > { %v3382_v25 = vrot.slane %v3360_v20, %v5481_v51  ;;  %v3389_v26 = vrot.slane %v3361_v21, %v5481_v51  ;;  %v3512_v55 = vrot.slane %v3484_v41, %v5481_v51  ;;  %v3562_v58 = vrot.slane %v3546_v38, %v5481_v51 }
0x14fb   : > { %v3390_v8 = vcombine.low %v3368_v22, %v3375_v23  ;;  %v3555_v43 = vcombine.high %v3553_v39, %v3553_v39  ;;  %v3569_v59 = vrot.slane %v3553_v39, %v5481_v51  ;;  %v3576_v62 = vrot.slane %v3554_v42, %v5481_v51 }
0x14fc   : > { %v3391_v36 = vcombine.low %v3382_v25, %v3389_v26  ;;  %v3513_v17 = vcombine.high %v3491_v48, %v3491_v48  ;;  %v3514_v0 = vcombine.high %v3498_v54, %v3498_v54  ;;  %v3515_v61 = vcombine.high %v3505_v24, %v3505_v24 }
0x14fd   : > { %v3398_v15 = vrot.slane %v3390_v8, %v5481_v51  ;;  %v3583_v63 = vrot.slane %v3555_v43, %v5481_v51  ;;  %v3516_v9 = vcombine.high %v3512_v55, %v3512_v55  ;;  %v3584_v60 = vcombine.high %v3562_v58, %v3562_v58 }
0x14fe   : > { %v3405_v27 = vrot.slane %v3391_v36, %v5481_v51  ;;  %v3585_v12 = vcombine.high %v3569_v59, %v3569_v59  ;;  %v3586_v13 = vcombine.high %v3576_v62, %v3576_v62 }
0x14ff   : > { %v3587_v14 = vcombine.high %v3583_v63, %v3583_v63 }
0x1500   : > { %v3406_v28 = vcombine.low %v3398_v15, %v3405_v27 }
0x1502   : > { %3408 = vadd.xlane.f32.xlu0 %v3406_v28 }
0x158b   : > { %v3409_v29 = vpop.xlane.xlu0 %3408 }
0x158c   : > { %v3410_v30 = vmul.f32 0.0078125, %v3409_v29 }
0x158e   : > { %v3411_v33 = vadd.f32 1e-05, %v3410_v30 }
0x1590   : > { %4520 = vrsqrt.f32 %v3411_v33 }
0x159d   : > { %v4521_v11 = vpop.eup %4520 }
0x159e   : > { %v3417_v16 = vrot.slane %v4521_v11, %v3296_v44  ;;  %v3421_v18 = vrot.slane %v4521_v11, %v3300_v45  ;;  %v3425_v19 = vrot.slane %v4521_v11, %v3304_v46  ;;  %v3429_v51 = vrot.slane %v4521_v11, %v3308_v47 }
0x159f   : > { %v3433_v20 = vrot.slane %v4521_v11, %v3312_v49  ;;  %v3437_v21 = vrot.slane %v4521_v11, %v3316_v50  ;;  %v3441_v44 = vrot.slane %v4521_v11, %v3320_v52  ;;  %v3445_v22 = vrot.slane %v4521_v11, %v3324_v53 }
0x15a0   : > { %v3454_v45 = vmul.f32 %v3417_v16, %v5863_v1  ;;  %v3455_v46 = vmul.f32 %v3421_v18, %v5865_v2  ;;  %v3456_v23 = vmul.f32 %v3425_v19, %v5867_v3  ;;  %v3457_v47 = vmul.f32 %v3429_v51, %v5869_v4 }
0x15a1   : > { %v3458_v49 = vmul.f32 %v3433_v20, %v5871_v5  ;;  %v3459_v25 = vmul.f32 %v3437_v21, %v5873_v6  ;;  %v3460_v50 = vmul.f32 %v3441_v44, %v5875_v56  ;;  %v3461_v26 = vmul.f32 %v3445_v22, %v5877_v7 }
0x15a2   : > { %v3525_v52 = vmul.f32 %v3491_v48, %v3454_v45  ;;  %v3526_v37 = vmul.f32 %v3505_v24, %v3455_v46  ;;  %v3527_v53 = vmul.f32 %v3513_v17, %v3456_v23  ;;  %v3528_v8 = vmul.f32 %v3515_v61, %v3457_v47 }
0x15a3   : > { %v3529_v1 = vmul.f32 %v3498_v54, %v3458_v49  ;;  %v3530_v2 = vmul.f32 %v3512_v55, %v3459_v25  ;;  %v3531_v3 = vmul.f32 %v3514_v0, %v3460_v50  ;;  %v3532_v36 = vmul.f32 %v3516_v9, %v3461_v26 }
0x15a4   : > { %v3596_v4 = vadd.f32 %v3562_v58, %v3525_v52  ;;  %v3597_v15 = vadd.f32 %v3576_v62, %v3526_v37  ;;  %v3598_v5 = vadd.f32 %v3584_v60, %v3527_v53  ;;  %v3599_v6 = vadd.f32 %v3586_v13, %v3528_v8 }
0x15a5   : > { %v3600_v56 = vadd.f32 %v3569_v59, %v3529_v1  ;;  %v3601_v7 = vadd.f32 %v3583_v63, %v3530_v2  ;;  %v3602_v27 = vadd.f32 %v3585_v12, %v3531_v3  ;;  %v3603_v28 = vadd.f32 %v3587_v14, %v3532_v36 }
0x15a6   : > { %3604 = vst [vmem:[%s984_s1] sm:$0x1] %v3596_v4  ;;  %3605 = vst [vmem:[%s984_s1 + $0x1] sm:$0x1] %v3597_v15 }
0x15a7   : > { %3606 = vst [vmem:[%s984_s1 + $0x2] sm:$0x1] %v3598_v5  ;;  %3607 = vst [vmem:[%s984_s1 + $0x3] sm:$0x1] %v3599_v6 }
0x15a8   : > { %3608 = vst [vmem:[%s984_s1 + $0x4] sm:$0x1] %v3600_v56  ;;  %3609 = vst [vmem:[%s984_s1 + $0x5] sm:$0x1] %v3601_v7 }
0x15a9   : > { %3610 = vst [vmem:[%s984_s1 + $0x6] sm:$0x1] %v3602_v27  ;;  %3611 = vst [vmem:[%s984_s1 + $0x7] sm:$0x1] %v3603_v28 }
0x15aa   : > { %4873 = shalt.err (!%p4870_p0)
}
0x15ab   : > { %s4874_s20 = scalar_lea.hbm %s5942_s2, 128  ;;  %s4878_s1 = scalar_lea.hbm %s6083_s10, 256 }
0x15ac   : > { %p4875_p6 = scmp.ne.s32.totalorder %s5942_s2, %s4874_s20  ;;  %p4879_p8 = scmp.lt.s32.totalorder %s5942_s2, %s6083_s10 }
0x15ad   : > { %p4880_p10 = scmp.lt.s32.totalorder %s4878_s1, %s4874_s20 }
0x15ae   : > { %p4876_p13 = pnand %p4875_p6, %p6085_p12 }
0x15af   : > { %p4881_p1 = por %p4880_p10, %p4879_p8 }
0x15b0   : > { %p4877_p4 = pneg %p4876_p13 }
0x15b2   : > { %p4882_p7 = pnand %p4881_p1, %p4877_p4 }
0x15b4   : > { %4885 = shalt.err (!%p4882_p7)
}
0x15b5   : > { %s4983_s19 = smov 1  }
0x15b6   : > { %4378 = dma.vmem_to_hbm [thread:$0]  (%p6085_p12), %s5944_s7, 128, %s5942_s2, %s3613_s21, %s4981_s30, %s4980_s16, %s4983_s19  }
0x15b7 PF: > { %s6086_s3 = sld [smem:[#allocation35_spill]] }
0x15b8   : > { %s6087_s0 = sld [smem:[#allocation41_spill]] }
0x15bd   : > { %s3640_s17 = sand.u32 1, %s6086_s3  }
0x15be   : > { %p6088_p5 = scmp.ne.s32.totalorder %s6087_s0, 0  ;;  %s3641_s20 = scalar_lea.sflag [#allocation4], %s3640_s17 }
0x15c0   : > { %p4409_p11 = pnand %p3894_p9, %p6088_p5 }
0x15c2   : > { %p4410_p3 = pneg %p4409_p11 }
0x15c4   : > { %4935 = dma.done.wait (%p4410_p3), %s3641_s20, 128  }
0x15c5   : > { %4937 = vsyncadd (%p4410_p3), %s3641_s20, 4294967168  ;;  %s6089_s24 = sld [smem:[#allocation37_spill]]  ;;  %s6091_s21 = smov %s4944_s22 }
0x15c6   : > { %s6090_s27 = sld [smem:[#allocation38_spill]]  ;;  %s6092_s22 = smov %s4948_s23 }
0x15cb   : > { %p39_p2 = scmp.ge.s32.totalorder %s6089_s24, 4  }
0x15cc   : > { %s6093_s23 = smov %s6090_s27 }
0x15cd   :  { %41 = sbr.rel (!%p39_p2) target bundleno = 22 (0x16), region = 300 }
0x15d2   :  { %3646 = vsyncpa [#allocation3], 1 }
0x15d3   :  { %3648 = vsyncpa [#allocation3 + $0x1], 1 }
0x15d4   :  { %3649 = vsyncpa [#allocation7], 1 }
0x15d5   :  { %3651 = vsyncpa [#allocation7 + $0x1], 1 }
0x15d6   :  { %3652 = vsyncpa [#allocation11], 1 }
0x15d7   :  { %3654 = vsyncpa [#allocation11 + $0x1], 1 }
0x15d8   :  { %3655 = vsyncpa [#allocation14], 1 }
0x15d9   :  { %3656 = vsyncpa [#allocation17], 1 }
0x15da   :  { %3657 = vsyncpa [#allocation20], 1 }
0x15db   :  { %3658 = vsyncpa [#allocation23], 1 }
0x15dc   :  { %3659 = vsyncpa [#allocation4], 1 }
0x15dd   :  { %3661 = vsyncpa [#allocation4 + $0x1], 1 }

</bundles_post_ra>
